<compile_context>
chip_gen: v6e
topology: v6e:2x2x1
jax: 0.10.0
libtpu: 0.0.40
codegen_flags: <defaults>
</compile_context>

<pallas_src>
import functools
import math

import jax
import jax.numpy as jnp
from jax.experimental import pallas as pl
from jax.experimental.pallas import tpu as pltpu

LN_EPS = 1e-5  # torch.nn.LayerNorm default


# ---------------------------------------------------------------------------
# Pallas kernel: batched per-block gMLP
#   LayerNorm -> in_project (split u/v) -> GELU -> BlockGatingUnit
#   (LayerNorm(v), block-diagonal spatial mix, u*(v+1)) -> out_project -> +x
# All tensors inside are 2-D (rows = B*P tokens, lanes = channels).
# ---------------------------------------------------------------------------
def _block_gmlp_kernel(x_ref, g1_ref, b1_ref, wu_ref, bu_ref, wv_ref, bv_ref,
                       wspbd_ref, bsp1_ref, g2_ref, b2_ref, wout_ref, bout_ref,
                       o_ref, *, mxu_dtype):
    x = x_ref[...].astype(jnp.float32)                      # (R, C)

    # LayerNorm over channels
    mu = jnp.mean(x, axis=-1, keepdims=True)
    var = jnp.mean(jnp.square(x - mu), axis=-1, keepdims=True)
    xn = (x - mu) * jax.lax.rsqrt(var + LN_EPS)
    xn = xn * g1_ref[...] + b1_ref[...]

    # in_project, split into the u / v halves (no lane-slice of a 2C result)
    xn_m = xn.astype(mxu_dtype)
    u = jnp.dot(xn_m, wu_ref[...], preferred_element_type=jnp.float32) + bu_ref[...]
    v = jnp.dot(xn_m, wv_ref[...], preferred_element_type=jnp.float32) + bv_ref[...]

    # exact erf GELU (torch nn.GELU default); elementwise, so split == fused
    inv_sqrt2 = 0.7071067811865476
    u = 0.5 * u * (1.0 + jax.lax.erf(u * inv_sqrt2))
    v = 0.5 * v * (1.0 + jax.lax.erf(v * inv_sqrt2))

    # BlockGatingUnit: LayerNorm(v) over channels
    mu_v = jnp.mean(v, axis=-1, keepdims=True)
    var_v = jnp.mean(jnp.square(v - mu_v), axis=-1, keepdims=True)
    vn = (v - mu_v) * jax.lax.rsqrt(var_v + LN_EPS)
    vn = vn * g2_ref[...] + b2_ref[...]                     # (R, CH)

    # Spatial (token) mix for all B blocks at once: block-diagonal matmul.
    # wspbd = kron(I_B, Wsp)  ->  vmix[b*P+p, c] = sum_q Wsp[p,q] * vn[b*P+q, c]
    # bsp1 already contains (bias + 1.0) tiled per block -> shape (R, 1).
    vmix = jnp.dot(wspbd_ref[...], vn.astype(mxu_dtype),
                   preferred_element_type=jnp.float32) + bsp1_ref[...]
    gated = u * vmix                                        # (R, CH)

    # out_project + residual (dropout_rate = 0.0 -> identity)
    out = jnp.dot(gated.astype(mxu_dtype), wout_ref[...],
                  preferred_element_type=jnp.float32) + bout_ref[...]
    o_ref[...] = (out + x).astype(o_ref.dtype)


# ---------------------------------------------------------------------------
# Blocking glue (pure JAX reshapes/transposes; equivalent of einops rearrange)
# ---------------------------------------------------------------------------
def _block_images(x, patch_size):
    n, h, w, d, c = x.shape
    fh, fw, fd = patch_size
    gh, gw, gd = h // fh, w // fw, d // fd
    x = x.reshape(n, gh, fh, gw, fw, gd, fd, c)
    x = x.transpose(0, 1, 3, 5, 2, 4, 6, 7)
    return x.reshape(n, gh * gw * gd, fh * fw * fd, c), (gh, gw, gd)


def _unblock_images(x, grid_size, patch_size):
    n = x.shape[0]
    c = x.shape[-1]
    gh, gw, gd = grid_size
    fh, fw, fd = patch_size
    x = x.reshape(n, gh, gw, gd, fh, fw, fd, c)
    x = x.transpose(0, 1, 4, 2, 5, 3, 6, 7)
    return x.reshape(n, gh * fh, gw * fw, gd * fd, c)


# ---------------------------------------------------------------------------
# Tiling heuristics
# ---------------------------------------------------------------------------
def _choose_blocks_per_step(m_blocks, p, c, ch,
                            target_rows=512, vmem_budget=8 << 20):
    """Pick B (blocks per grid step) so R = B*P is ~512 rows, 8-aligned, and
    the f32 working set stays within a conservative VMEM budget."""
    per_row_bytes = 4 * (2 * c + 6 * ch)       # x, out, u, v, vn, vmix, gated...
    rows_cap = max(p, vmem_budget // max(per_row_bytes, 1))
    b = max(1, min(target_rows, int(rows_cap)) // p)
    step = 8 // math.gcd(p, 8)                 # keep (B*P) % 8 == 0 (sublane tile)
    b = max(step, (b // step) * step)
    b_cap = max(step, ((m_blocks + step - 1) // step) * step)
    return min(b, b_cap)


# ---------------------------------------------------------------------------
# Wrapper
# ---------------------------------------------------------------------------
def block_gmlp_layer(x, params, block_size, *, use_bf16_matmul=True,
                     target_rows_per_step=512):
    fh, fw, fd = block_size
    n, h, w, d, c = x.shape

    x_p = jnp.pad(x, ((0, 0), (0, (-h) % fh), (0, (-w) % fw),
                      (0, (-d) % fd), (0, 0)))

    xb, grid_size = _block_images(x_p, block_size)     # (n, G, P, c)
    G, P = xb.shape[1], xb.shape[2]
    m_blocks = n * G
    xb2 = xb.reshape(m_blocks * P, c)                  # block-major, token-minor

    g1, b1, win, bin_, wsp, bsp, g2, b2, wout, bout = params
    c2 = win.shape[1]
    ch = c2 // 2
    assert wsp.shape[0] == P, "spatial-mix weight must match tokens per block"

    # --- tile sizing -------------------------------------------------------
    B = _choose_blocks_per_step(m_blocks, P, c, ch, target_rows_per_step)
    R = B * P
    n_tiles = pl.cdiv(m_blocks, B)
    pad_rows = n_tiles * R - m_blocks * P
    if pad_rows:
        # zero rows stay finite through LN and never mix into valid blocks
        xb2 = jnp.pad(xb2, ((0, pad_rows), (0, 0)))

    # --- parameter prep (split, fold, cast) --------------------------------
    f32 = jnp.float32
    mxu_dtype = jnp.bfloat16 if use_bf16_matmul else f32
    wu = win[:, :ch].astype(mxu_dtype)                 # in_project, u half
    wv = win[:, ch:].astype(mxu_dtype)                 # in_project, v half
    bu = bin_[:, :ch].astype(f32)
    bv = bin_[:, ch:].astype(f32)
    wsp_bd = jnp.kron(jnp.eye(B, dtype=f32),
                      wsp.astype(f32)).astype(mxu_dtype)        # (R, R)
    bsp1 = jnp.tile(bsp.astype(f32) + 1.0, (B, 1))              # (R, 1), +1 folded
    wout_m = wout.astype(mxu_dtype)
    g1f, b1f, g2f, b2f, boutf = (a.astype(f32) for a in (g1, b1, g2, b2, bout))

    weights = (g1f, b1f, wu, bu, wv, bv, wsp_bd, bsp1, g2f, b2f, wout_m, boutf)

    # --- VMEM budget (double-buffered IO tiles + weights + intermediates) --
    est = 2 * 2 * R * c * 4
    est += 2 * sum(a.size * a.dtype.itemsize for a in weights)
    est += R * 4 * (2 * c + 6 * ch)
    vmem_limit = int(min(48 * 2 ** 20, max(32 * 2 ** 20, 2 * est)))

    kernel = functools.partial(_block_gmlp_kernel, mxu_dtype=mxu_dtype)

    def _const_spec(a):
        nd = a.ndim
        return pl.BlockSpec(a.shape, lambda i, _nd=nd: (0,) * _nd)

    out = pl.pallas_call(
        kernel,
        out_shape=jax.ShapeDtypeStruct(xb2.shape, x.dtype),
        grid=(n_tiles,),
        in_specs=[pl.BlockSpec((R, c), lambda i: (i, 0))]
                 + [_const_spec(a) for a in weights],
        out_specs=pl.BlockSpec((R, c), lambda i: (i, 0)),
        compiler_params=pltpu.CompilerParams(
            dimension_semantics=("parallel",),
            vmem_limit_bytes=vmem_limit),
    )(xb2, *weights)

    out = out[: m_blocks * P].reshape(n, G, P, c)
    out = _unblock_images(out, grid_size, block_size)
    return out[:, :h, :w, :d, :]


# ---------------------------------------------------------------------------
# Pure-JAX reference (for correctness check)
# ---------------------------------------------------------------------------
def block_gmlp_reference(x, params, block_size):
    fh, fw, fd = block_size
    n, h, w, d, c = x.shape
    x = jnp.pad(x, ((0, 0), (0, (-h) % fh), (0, (-w) % fw), (0, (-d) % fd), (0, 0)))
    xb, grid_size = _block_images(x, block_size)   # (n, G, P, c)

    g1, b1, win, bin_, wsp, bsp, g2, b2, wout, bout = params
    c_half = win.shape[1] // 2

    def ln(z, g, b):
        mu = jnp.mean(z, axis=-1, keepdims=True)
        var = jnp.mean(jnp.square(z - mu), axis=-1, keepdims=True)
        return (z - mu) * jax.lax.rsqrt(var + LN_EPS) * g.reshape(-1) + b.reshape(-1)

    shortcut = xb
    y = ln(xb, g1, b1)
    y = y @ win + bin_.reshape(-1)
    y = 0.5 * y * (1.0 + jax.lax.erf(y / jnp.sqrt(2.0)))
    u, v = y[..., :c_half], y[..., c_half:]
    vn = ln(v, g2, b2)
    vmix = jnp.einsum('pq,ngqc->ngpc', wsp, vn) + bsp.reshape(1, 1, -1, 1)
    out = (u * (vmix + 1.0)) @ wout + bout.reshape(-1)
    out = out + shortcut
    out = _unblock_images(out, grid_size, block_size)
    return out[:, :h, :w, :d, :]


# ---------------------------------------------------------------------------
# Deterministic parameter init (matches the module's __init__ shapes)
# ---------------------------------------------------------------------------
def init_params(key, num_channels, block_size, factor=2):
    c = num_channels
    c2 = c * factor
    p = block_size[0] * block_size[1] * block_size[2]
    k = jax.random.split(key, 6)
    g1 = jnp.ones((1, c), jnp.float32)                               # LayerNorm(C)
    b1 = jnp.zeros((1, c), jnp.float32)
    win = jax.random.normal(k[0], (c, c2), jnp.float32) * 0.05       # in_project W^T
    bin_ = jax.random.normal(k[1], (1, c2), jnp.float32) * 0.05
    wsp = jax.random.normal(k[2], (p, p), jnp.float32) * 0.05        # BlockGatingUnit.Dense_0
    bsp = jax.random.normal(k[3], (p, 1), jnp.float32) * 0.05
    g2 = jnp.ones((1, c2 // 2), jnp.float32)                         # BlockGatingUnit.LayerNorm
    b2 = jnp.zeros((1, c2 // 2), jnp.float32)
    wout = jax.random.normal(k[4], (c2 // 2, c), jnp.float32) * 0.05  # out_project W^T
    bout = jax.random.normal(k[5], (1, c), jnp.float32) * 0.05
    return (g1, b1, win, bin_, wsp, bsp, g2, b2, wout, bout)


if __name__ == "__main__":
    key = jax.random.PRNGKey(0)
    k_x, k_p = jax.random.split(key)

    block_size = (2, 2, 2)          # fh, fw, fd  -> P = 8 tokens per block
    num_channels = 32
    x = jax.random.normal(k_x, (2, 4, 4, 4, num_channels), jnp.float32)  # NHWDC

    params = init_params(k_p, num_channels, block_size, factor=2)

    out = block_gmlp_layer(x, params, block_size)
    out = jax.block_until_ready(out)

    ref = block_gmlp_reference(x, params, block_size)
    assert out.shape == x.shape
    # bf16 MXU operands with f32 accumulation -> loosened tolerance vs f32 ref
    max_err = float(jnp.max(jnp.abs(out - ref)))
    assert jnp.allclose(out, ref, atol=2e-2, rtol=2e-2), f"max abs err {max_err}"

    print("KERNEL_OK")
</pallas_src>

<mosaic_0001>
module attributes {stable_mosaic.version = 11 : i64} {
  func.func @_block_gmlp_kernel(%arg0: i32, %arg1: memref<128x32xf32, #tpu.memory_space<vmem>>, %arg2: memref<1x32xf32, #tpu.memory_space<vmem>>, %arg3: memref<1x32xf32, #tpu.memory_space<vmem>>, %arg4: memref<32x32xbf16, #tpu.memory_space<vmem>>, %arg5: memref<1x32xf32, #tpu.memory_space<vmem>>, %arg6: memref<32x32xbf16, #tpu.memory_space<vmem>>, %arg7: memref<1x32xf32, #tpu.memory_space<vmem>>, %arg8: memref<128x128xbf16, #tpu.memory_space<vmem>>, %arg9: memref<128x1xf32, #tpu.memory_space<vmem>>, %arg10: memref<1x32xf32, #tpu.memory_space<vmem>>, %arg11: memref<1x32xf32, #tpu.memory_space<vmem>>, %arg12: memref<32x32xbf16, #tpu.memory_space<vmem>>, %arg13: memref<1x32xf32, #tpu.memory_space<vmem>>, %arg14: memref<128x32xf32, #tpu.memory_space<vmem>>) attributes {dimension_semantics = [#tpu.dimension_semantics<parallel>], iteration_bounds = array<i64: 1>, scalar_prefetch = 0 : i64, scratch_operands = 0 : i64, tpu.core_type = #tpu.core_type<tc>, window_params = [{transform_indices = @transform_0, window_bounds = array<i64: 128, 32>}, {pipeline_mode = #tpu.pipeline_mode<synchronous>, transform_indices = @transform_1, window_bounds = array<i64: 1, 32>}, {pipeline_mode = #tpu.pipeline_mode<synchronous>, transform_indices = @transform_2, window_bounds = array<i64: 1, 32>}, {pipeline_mode = #tpu.pipeline_mode<synchronous>, transform_indices = @transform_3, window_bounds = array<i64: 32, 32>}, {pipeline_mode = #tpu.pipeline_mode<synchronous>, transform_indices = @transform_4, window_bounds = array<i64: 1, 32>}, {pipeline_mode = #tpu.pipeline_mode<synchronous>, transform_indices = @transform_5, window_bounds = array<i64: 32, 32>}, {pipeline_mode = #tpu.pipeline_mode<synchronous>, transform_indices = @transform_6, window_bounds = array<i64: 1, 32>}, {pipeline_mode = #tpu.pipeline_mode<synchronous>, transform_indices = @transform_7, window_bounds = array<i64: 128, 128>}, {pipeline_mode = #tpu.pipeline_mode<synchronous>, transform_indices = @transform_8, window_bounds = array<i64: 128, 1>}, {pipeline_mode = #tpu.pipeline_mode<synchronous>, transform_indices = @transform_9, window_bounds = array<i64: 1, 32>}, {pipeline_mode = #tpu.pipeline_mode<synchronous>, transform_indices = @transform_10, window_bounds = array<i64: 1, 32>}, {pipeline_mode = #tpu.pipeline_mode<synchronous>, transform_indices = @transform_11, window_bounds = array<i64: 32, 32>}, {pipeline_mode = #tpu.pipeline_mode<synchronous>, transform_indices = @transform_12, window_bounds = array<i64: 1, 32>}, {transform_indices = @transform_13, window_bounds = array<i64: 128, 32>}]} {
    %c0 = arith.constant 0 : index
    %c0_0 = arith.constant 0 : index
    %0 = vector.load %arg1[%c0, %c0_0] : memref<128x32xf32, #tpu.memory_space<vmem>>, vector<128x32xf32>
    %cst = arith.constant dense<0.000000e+00> : vector<128xf32>
    %1 = vector.multi_reduction <add>, %0, %cst [1] : vector<128x32xf32> to vector<128xf32>
    %2 = vector.shape_cast %1 : vector<128xf32> to vector<128x1xf32>
    %cst_1 = arith.constant 3.200000e+01 : f32
    %3 = vector.broadcast %cst_1 : f32 to vector<128x1xf32>
    %4 = arith.divf %2, %3 : vector<128x1xf32>
    %5 = vector.broadcast %4 : vector<128x1xf32> to vector<128x32xf32>
    %6 = arith.subf %0, %5 : vector<128x32xf32>
    %7 = arith.mulf %6, %6 : vector<128x32xf32>
    %cst_2 = arith.constant dense<0.000000e+00> : vector<128xf32>
    %8 = vector.multi_reduction <add>, %7, %cst_2 [1] : vector<128x32xf32> to vector<128xf32>
    %9 = vector.shape_cast %8 : vector<128xf32> to vector<128x1xf32>
    %cst_3 = arith.constant 3.200000e+01 : f32
    %10 = vector.broadcast %cst_3 : f32 to vector<128x1xf32>
    %11 = arith.divf %9, %10 : vector<128x1xf32>
    %12 = vector.broadcast %4 : vector<128x1xf32> to vector<128x32xf32>
    %13 = arith.subf %0, %12 : vector<128x32xf32>
    %cst_4 = arith.constant 9.99999974E-6 : f32
    %14 = vector.broadcast %cst_4 : f32 to vector<128x1xf32>
    %15 = arith.addf %11, %14 : vector<128x1xf32>
    %16 = math.rsqrt %15 : vector<128x1xf32>
    %17 = vector.broadcast %16 : vector<128x1xf32> to vector<128x32xf32>
    %18 = arith.mulf %13, %17 : vector<128x32xf32>
    %c0_5 = arith.constant 0 : index
    %c0_6 = arith.constant 0 : index
    %19 = vector.load %arg2[%c0_5, %c0_6] : memref<1x32xf32, #tpu.memory_space<vmem>>, vector<1x32xf32>
    %20 = vector.broadcast %19 : vector<1x32xf32> to vector<128x32xf32>
    %21 = arith.mulf %18, %20 : vector<128x32xf32>
    %c0_7 = arith.constant 0 : index
    %c0_8 = arith.constant 0 : index
    %22 = vector.load %arg3[%c0_7, %c0_8] : memref<1x32xf32, #tpu.memory_space<vmem>>, vector<1x32xf32>
    %23 = vector.broadcast %22 : vector<1x32xf32> to vector<128x32xf32>
    %24 = arith.addf %21, %23 : vector<128x32xf32>
    %25 = arith.truncf %24 : vector<128x32xf32> to vector<128x32xbf16>
    %c0_9 = arith.constant 0 : index
    %c0_10 = arith.constant 0 : index
    %26 = vector.load %arg4[%c0_9, %c0_10] : memref<32x32xbf16, #tpu.memory_space<vmem>>, vector<32x32xbf16>
    %cst_11 = arith.constant dense<0.000000e+00> : vector<128x32xf32>
    %27 = tpu.matmul %25, %26, %cst_11 {dimension_numbers = #tpu.dot_dimension_numbers<[1], [0], [0], [1], [0, 0, 1, 1], [], []>} : vector<128x32xbf16>, vector<32x32xbf16>, vector<128x32xf32> -> vector<128x32xf32>
    %c0_12 = arith.constant 0 : index
    %c0_13 = arith.constant 0 : index
    %28 = vector.load %arg5[%c0_12, %c0_13] : memref<1x32xf32, #tpu.memory_space<vmem>>, vector<1x32xf32>
    %29 = vector.broadcast %28 : vector<1x32xf32> to vector<128x32xf32>
    %30 = arith.addf %27, %29 : vector<128x32xf32>
    %c0_14 = arith.constant 0 : index
    %c0_15 = arith.constant 0 : index
    %31 = vector.load %arg6[%c0_14, %c0_15] : memref<32x32xbf16, #tpu.memory_space<vmem>>, vector<32x32xbf16>
    %cst_16 = arith.constant dense<0.000000e+00> : vector<128x32xf32>
    %32 = tpu.matmul %25, %31, %cst_16 {dimension_numbers = #tpu.dot_dimension_numbers<[1], [0], [0], [1], [0, 0, 1, 1], [], []>} : vector<128x32xbf16>, vector<32x32xbf16>, vector<128x32xf32> -> vector<128x32xf32>
    %c0_17 = arith.constant 0 : index
    %c0_18 = arith.constant 0 : index
    %33 = vector.load %arg7[%c0_17, %c0_18] : memref<1x32xf32, #tpu.memory_space<vmem>>, vector<1x32xf32>
    %34 = vector.broadcast %33 : vector<1x32xf32> to vector<128x32xf32>
    %35 = arith.addf %32, %34 : vector<128x32xf32>
    %cst_19 = arith.constant 5.000000e-01 : f32
    %36 = vector.broadcast %cst_19 : f32 to vector<128x32xf32>
    %37 = arith.mulf %36, %30 : vector<128x32xf32>
    %cst_20 = arith.constant 0.707106769 : f32
    %38 = vector.broadcast %cst_20 : f32 to vector<128x32xf32>
    %39 = arith.mulf %30, %38 : vector<128x32xf32>
    %40 = math.erf %39 : vector<128x32xf32>
    %cst_21 = arith.constant 1.000000e+00 : f32
    %41 = vector.broadcast %cst_21 : f32 to vector<128x32xf32>
    %42 = arith.addf %41, %40 : vector<128x32xf32>
    %43 = arith.mulf %37, %42 : vector<128x32xf32>
    %cst_22 = arith.constant 5.000000e-01 : f32
    %44 = vector.broadcast %cst_22 : f32 to vector<128x32xf32>
    %45 = arith.mulf %44, %35 : vector<128x32xf32>
    %cst_23 = arith.constant 0.707106769 : f32
    %46 = vector.broadcast %cst_23 : f32 to vector<128x32xf32>
    %47 = arith.mulf %35, %46 : vector<128x32xf32>
    %48 = math.erf %47 : vector<128x32xf32>
    %cst_24 = arith.constant 1.000000e+00 : f32
    %49 = vector.broadcast %cst_24 : f32 to vector<128x32xf32>
    %50 = arith.addf %49, %48 : vector<128x32xf32>
    %51 = arith.mulf %45, %50 : vector<128x32xf32>
    %cst_25 = arith.constant dense<0.000000e+00> : vector<128xf32>
    %52 = vector.multi_reduction <add>, %51, %cst_25 [1] : vector<128x32xf32> to vector<128xf32>
    %53 = vector.shape_cast %52 : vector<128xf32> to vector<128x1xf32>
    %cst_26 = arith.constant 3.200000e+01 : f32
    %54 = vector.broadcast %cst_26 : f32 to vector<128x1xf32>
    %55 = arith.divf %53, %54 : vector<128x1xf32>
    %56 = vector.broadcast %55 : vector<128x1xf32> to vector<128x32xf32>
    %57 = arith.subf %51, %56 : vector<128x32xf32>
    %58 = arith.mulf %57, %57 : vector<128x32xf32>
    %cst_27 = arith.constant dense<0.000000e+00> : vector<128xf32>
    %59 = vector.multi_reduction <add>, %58, %cst_27 [1] : vector<128x32xf32> to vector<128xf32>
    %60 = vector.shape_cast %59 : vector<128xf32> to vector<128x1xf32>
    %cst_28 = arith.constant 3.200000e+01 : f32
    %61 = vector.broadcast %cst_28 : f32 to vector<128x1xf32>
    %62 = arith.divf %60, %61 : vector<128x1xf32>
    %63 = vector.broadcast %55 : vector<128x1xf32> to vector<128x32xf32>
    %64 = arith.subf %51, %63 : vector<128x32xf32>
    %cst_29 = arith.constant 9.99999974E-6 : f32
    %65 = vector.broadcast %cst_29 : f32 to vector<128x1xf32>
    %66 = arith.addf %62, %65 : vector<128x1xf32>
    %67 = math.rsqrt %66 : vector<128x1xf32>
    %68 = vector.broadcast %67 : vector<128x1xf32> to vector<128x32xf32>
    %69 = arith.mulf %64, %68 : vector<128x32xf32>
    %c0_30 = arith.constant 0 : index
    %c0_31 = arith.constant 0 : index
    %70 = vector.load %arg10[%c0_30, %c0_31] : memref<1x32xf32, #tpu.memory_space<vmem>>, vector<1x32xf32>
    %71 = vector.broadcast %70 : vector<1x32xf32> to vector<128x32xf32>
    %72 = arith.mulf %69, %71 : vector<128x32xf32>
    %c0_32 = arith.constant 0 : index
    %c0_33 = arith.constant 0 : index
    %73 = vector.load %arg11[%c0_32, %c0_33] : memref<1x32xf32, #tpu.memory_space<vmem>>, vector<1x32xf32>
    %74 = vector.broadcast %73 : vector<1x32xf32> to vector<128x32xf32>
    %75 = arith.addf %72, %74 : vector<128x32xf32>
    %c0_34 = arith.constant 0 : index
    %c0_35 = arith.constant 0 : index
    %76 = vector.load %arg8[%c0_34, %c0_35] : memref<128x128xbf16, #tpu.memory_space<vmem>>, vector<128x128xbf16>
    %77 = arith.truncf %75 : vector<128x32xf32> to vector<128x32xbf16>
    %cst_36 = arith.constant dense<0.000000e+00> : vector<128x32xf32>
    %78 = tpu.matmul %76, %77, %cst_36 {dimension_numbers = #tpu.dot_dimension_numbers<[1], [0], [0], [1], [0, 0, 1, 1], [], []>} : vector<128x128xbf16>, vector<128x32xbf16>, vector<128x32xf32> -> vector<128x32xf32>
    %c0_37 = arith.constant 0 : index
    %c0_38 = arith.constant 0 : index
    %79 = vector.load %arg9[%c0_37, %c0_38] : memref<128x1xf32, #tpu.memory_space<vmem>>, vector<128x1xf32>
    %80 = vector.broadcast %79 : vector<128x1xf32> to vector<128x32xf32>
    %81 = arith.addf %78, %80 : vector<128x32xf32>
    %82 = arith.mulf %43, %81 : vector<128x32xf32>
    %83 = arith.truncf %82 : vector<128x32xf32> to vector<128x32xbf16>
    %c0_39 = arith.constant 0 : index
    %c0_40 = arith.constant 0 : index
    %84 = vector.load %arg12[%c0_39, %c0_40] : memref<32x32xbf16, #tpu.memory_space<vmem>>, vector<32x32xbf16>
    %cst_41 = arith.constant dense<0.000000e+00> : vector<128x32xf32>
    %85 = tpu.matmul %83, %84, %cst_41 {dimension_numbers = #tpu.dot_dimension_numbers<[1], [0], [0], [1], [0, 0, 1, 1], [], []>} : vector<128x32xbf16>, vector<32x32xbf16>, vector<128x32xf32> -> vector<128x32xf32>
    %c0_42 = arith.constant 0 : index
    %c0_43 = arith.constant 0 : index
    %86 = vector.load %arg13[%c0_42, %c0_43] : memref<1x32xf32, #tpu.memory_space<vmem>>, vector<1x32xf32>
    %87 = vector.broadcast %86 : vector<1x32xf32> to vector<128x32xf32>
    %88 = arith.addf %85, %87 : vector<128x32xf32>
    %89 = arith.addf %88, %0 : vector<128x32xf32>
    %c0_44 = arith.constant 0 : index
    %c0_45 = arith.constant 0 : index
    %90 = vector.load %arg14[%c0_44, %c0_45] : memref<128x32xf32, #tpu.memory_space<vmem>>, vector<128x32xf32>
    tpu.vector_store %arg14[%c0_44, %c0_45], %89 {strides = array<i32>} : memref<128x32xf32, #tpu.memory_space<vmem>>, vector<128x32xf32>,
    return
  }
  func.func @transform_0(%arg0: i32) -> (i32, i32) {
    %c0_i32 = arith.constant 0 : i32
    %c0_i32_0 = arith.constant 0 : i32
    return %arg0, %c0_i32 : i32, i32
  }
  func.func @transform_1(%arg0: i32) -> (i32, i32) {
    %c0_i32 = arith.constant 0 : i32
    %c0_i32_0 = arith.constant 0 : i32
    %c0_i32_1 = arith.constant 0 : i32
    return %c0_i32, %c0_i32_0 : i32, i32
  }
  func.func @transform_2(%arg0: i32) -> (i32, i32) {
    %c0_i32 = arith.constant 0 : i32
    %c0_i32_0 = arith.constant 0 : i32
    %c0_i32_1 = arith.constant 0 : i32
    return %c0_i32, %c0_i32_0 : i32, i32
  }
  func.func @transform_3(%arg0: i32) -> (i32, i32) {
    %c0_i32 = arith.constant 0 : i32
    %c0_i32_0 = arith.constant 0 : i32
    %c0_i32_1 = arith.constant 0 : i32
    return %c0_i32, %c0_i32_0 : i32, i32
  }
  func.func @transform_4(%arg0: i32) -> (i32, i32) {
    %c0_i32 = arith.constant 0 : i32
    %c0_i32_0 = arith.constant 0 : i32
    %c0_i32_1 = arith.constant 0 : i32
    return %c0_i32, %c0_i32_0 : i32, i32
  }
  func.func @transform_5(%arg0: i32) -> (i32, i32) {
    %c0_i32 = arith.constant 0 : i32
    %c0_i32_0 = arith.constant 0 : i32
    %c0_i32_1 = arith.constant 0 : i32
    return %c0_i32, %c0_i32_0 : i32, i32
  }
  func.func @transform_6(%arg0: i32) -> (i32, i32) {
    %c0_i32 = arith.constant 0 : i32
    %c0_i32_0 = arith.constant 0 : i32
    %c0_i32_1 = arith.constant 0 : i32
    return %c0_i32, %c0_i32_0 : i32, i32
  }
  func.func @transform_7(%arg0: i32) -> (i32, i32) {
    %c0_i32 = arith.constant 0 : i32
    %c0_i32_0 = arith.constant 0 : i32
    %c0_i32_1 = arith.constant 0 : i32
    return %c0_i32, %c0_i32_0 : i32, i32
  }
  func.func @transform_8(%arg0: i32) -> (i32, i32) {
    %c0_i32 = arith.constant 0 : i32
    %c0_i32_0 = arith.constant 0 : i32
    %c0_i32_1 = arith.constant 0 : i32
    return %c0_i32, %c0_i32_0 : i32, i32
  }
  func.func @transform_9(%arg0: i32) -> (i32, i32) {
    %c0_i32 = arith.constant 0 : i32
    %c0_i32_0 = arith.constant 0 : i32
    %c0_i32_1 = arith.constant 0 : i32
    return %c0_i32, %c0_i32_0 : i32, i32
  }
  func.func @transform_10(%arg0: i32) -> (i32, i32) {
    %c0_i32 = arith.constant 0 : i32
    %c0_i32_0 = arith.constant 0 : i32
    %c0_i32_1 = arith.constant 0 : i32
    return %c0_i32, %c0_i32_0 : i32, i32
  }
  func.func @transform_11(%arg0: i32) -> (i32, i32) {
    %c0_i32 = arith.constant 0 : i32
    %c0_i32_0 = arith.constant 0 : i32
    %c0_i32_1 = arith.constant 0 : i32
    return %c0_i32, %c0_i32_0 : i32, i32
  }
  func.func @transform_12(%arg0: i32) -> (i32, i32) {
    %c0_i32 = arith.constant 0 : i32
    %c0_i32_0 = arith.constant 0 : i32
    %c0_i32_1 = arith.constant 0 : i32
    return %c0_i32, %c0_i32_0 : i32, i32
  }
  func.func @transform_13(%arg0: i32) -> (i32, i32) {
    %c0_i32 = arith.constant 0 : i32
    %c0_i32_0 = arith.constant 0 : i32
    return %arg0, %c0_i32 : i32, i32
  }
}

</mosaic_0001>

<bundles_post_ra>
// kernel: tpu_custom_call.1
= control target key start
LH: loop header
LB: loop body
LE: loop exit
PB: predicated region body
PF: predicated region fallthrough
CT: control target
= control target key end

     0   :  { %vm61_vm0 = vcmask 261120   ;;  %s2721_s0 = inlined_call_operand.vmem [shape: f32[128,32], index: 0, kind: input, shape index: {}]   ;;  %s2722_s3 = inlined_call_operand.vmem [shape: bf16[32,32], index: 3, kind: input, shape index: {}]   ;;  %s2723_s5 = inlined_call_operand.vmem [shape: bf16[32,32], index: 5, kind: input, shape index: {}]   ;;  %s2724_s1 = inlined_call_operand.vmem [shape: f32[1,32], index: 1, kind: input, shape index: {}]   ;;  %s2725_s2 = inlined_call_operand.vmem [shape: f32[1,32], index: 2, kind: input, shape index: {}]   ;;  %s2726_s6 = inlined_call_operand.vmem [shape: f32[1,32], index: 6, kind: input, shape index: {}]   ;;  %s2727_s7 = inlined_call_operand.vmem [shape: bf16[128,128], index: 7, kind: input, shape index: {}]   ;;  %s2728_s8 = inlined_call_operand.vmem [shape: f32[128,1], index: 8, kind: input, shape index: {}]   ;;  %s2729_s11 = inlined_call_operand.vmem [shape: bf16[32,32], index: 11, kind: input, shape index: {}]   ;;  %s2730_s9 = inlined_call_operand.vmem [shape: f32[1,32], index: 9, kind: input, shape index: {}]   ;;  %s2731_s10 = inlined_call_operand.vmem [shape: f32[1,32], index: 10, kind: input, shape index: {}]   ;;  %s2732_s4 = inlined_call_operand.vmem [shape: f32[1,32], index: 4, kind: input, shape index: {}]   ;;  %s2733_s12 = inlined_call_operand.vmem [shape: f32[1,32], index: 12, kind: input, shape index: {}]   ;;  %s2734_s13 = inlined_call_operand.vmem [shape: f32[128,32], index: 13, kind: output, shape index: {}]  }
   0x1   :  { %v45_v0 = vld [vmem:[%s2721_s0] sm:$0xff]  ;;  %v47_v1 = vld [vmem:[%s2721_s0 + $0x10] sm:$0xff]  ;;  %v46_v2 = vld [vmem:[%s2721_s0 + $0x8] sm:$0xff] }
   0x2   :  { %v62_v3 = vsel %vm61_vm0, %v45_v0, 0.0  ;;  %v68_v4 = vsel %vm61_vm0, %v47_v1, 0.0  ;;  %v48_v5 = vld [vmem:[%s2721_s0 + $0x18] sm:$0xff]  ;;  %v65_v6 = vsel %vm61_vm0, %v46_v2, 0.0  ;;  %v49_v8 = vld [vmem:[%s2721_s0 + $0x20] sm:$0xff]  ;;  %v50_v9 = vld [vmem:[%s2721_s0 + $0x28] sm:$0xff] }
   0x3   :  { %63 = vadd.xlane.f32.xlu0 %v62_v3  ;;  %69 = vadd.xlane.f32.xlu1 %v68_v4  ;;  %v71_v7 = vsel %vm61_vm0, %v48_v5, 0.0  ;;  %v74_v10 = vsel %vm61_vm0, %v49_v8, 0.0  ;;  %v77_v11 = vsel %vm61_vm0, %v50_v9, 0.0  ;;  %v1914_v12 = vld [vmem:[%s2721_s0 + $0x30] sm:$0xff]  ;;  %v1919_v13 = vld [vmem:[%s2721_s0 + $0x38] sm:$0xff]  ;;  %v1928_v16 = vld [vmem:[%s2721_s0 + $0x40] sm:$0xff] }
   0x4   :  { %v80_v14 = vsel %vm61_vm0, %v1914_v12, 0.0  ;;  %v83_v15 = vsel %vm61_vm0, %v1919_v13, 0.0  ;;  %v1933_v17 = vld [vmem:[%s2721_s0 + $0x48] sm:$0xff]  ;;  %v86_v18 = vsel %vm61_vm0, %v1928_v16, 0.0  ;;  %v1942_v20 = vld [vmem:[%s2721_s0 + $0x50] sm:$0xff]  ;;  %v1947_v21 = vld [vmem:[%s2721_s0 + $0x58] sm:$0xff] }
   0x5   :  { %v89_v19 = vsel %vm61_vm0, %v1933_v17, 0.0  ;;  %v92_v22 = vsel %vm61_vm0, %v1942_v20, 0.0  ;;  %v95_v23 = vsel %vm61_vm0, %v1947_v21, 0.0  ;;  %v1956_v24 = vld [vmem:[%s2721_s0 + $0x60] sm:$0xff]  ;;  %v1961_v25 = vld [vmem:[%s2721_s0 + $0x68] sm:$0xff]  ;;  %v1970_v28 = vld [vmem:[%s2721_s0 + $0x70] sm:$0xff] }
   0x6   :  { %v98_v26 = vsel %vm61_vm0, %v1956_v24, 0.0  ;;  %v101_v27 = vsel %vm61_vm0, %v1961_v25, 0.0  ;;  %v1975_v29 = vld [vmem:[%s2721_s0 + $0x78] sm:$0xff]  ;;  %v104_v30 = vsel %vm61_vm0, %v1970_v28, 0.0 }
   0x7   :  { %66 = vadd.xlane.f32.xlu0 %v65_v6  ;;  %72 = vadd.xlane.f32.xlu1 %v71_v7  ;;  %v107_v31 = vsel %vm61_vm0, %v1975_v29, 0.0 }
   0xb   :  { %75 = vadd.xlane.f32.xlu0 %v74_v10  ;;  %78 = vadd.xlane.f32.xlu1 %v77_v11 }
   0xf   :  { %81 = vadd.xlane.f32.xlu0 %v80_v14  ;;  %84 = vadd.xlane.f32.xlu1 %v83_v15 }
  0x13   :  { %87 = vadd.xlane.f32.xlu0 %v86_v18  ;;  %90 = vadd.xlane.f32.xlu1 %v89_v19 }
  0x17   :  { %93 = vadd.xlane.f32.xlu0 %v92_v22  ;;  %96 = vadd.xlane.f32.xlu1 %v95_v23 }
  0x1b   :  { %99 = vadd.xlane.f32.xlu0 %v98_v26  ;;  %102 = vadd.xlane.f32.xlu1 %v101_v27 }
  0x1f   :  { %105 = vadd.xlane.f32.xlu0 %v104_v30  ;;  %108 = vadd.xlane.f32.xlu1 %v107_v31 }
  0x8c   :  { %v64_v32 = vpop.xlane.xlu0 %63  ;;  %v70_v33 = vpop.xlane.xlu1 %69 }
  0x8d   :  { %v111_v34 = vmul.f32 0.03125, %v64_v32  ;;  %v113_v35 = vmul.f32 0.03125, %v70_v33 }
  0x8f   :  { %v1981_v36 = vsub.f32 %v45_v0, %v111_v34  ;;  %v1983_v37 = vsub.f32 %v47_v1, %v113_v35 }
  0x90   :  { %v67_v38 = vpop.xlane.xlu0 %66  ;;  %v73_v39 = vpop.xlane.xlu1 %72 }
  0x91   :  { %v112_v40 = vmul.f32 0.03125, %v67_v38  ;;  %v114_v41 = vmul.f32 0.03125, %v73_v39  ;;  %v143_v42 = vmul.f32 %v1981_v36, %v1981_v36  ;;  %v145_v43 = vmul.f32 %v1983_v37, %v1983_v37 }
  0x93   :  { %v1989_v44 = vsub.f32 %v46_v2, %v112_v40  ;;  %v1991_v45 = vsub.f32 %v48_v5, %v114_v41  ;;  %v159_v46 = vsel %vm61_vm0, %v143_v42, 0.0  ;;  %v165_v49 = vsel %vm61_vm0, %v145_v43, 0.0 }
  0x94   :  { %160 = vadd.xlane.f32.xlu0 %v159_v46  ;;  %v76_v47 = vpop.xlane.xlu0 %75  ;;  %v79_v48 = vpop.xlane.xlu1 %78 }
  0x95   :  { %v115_v50 = vmul.f32 0.03125, %v76_v47  ;;  %v116_v51 = vmul.f32 0.03125, %v79_v48  ;;  %v144_v52 = vmul.f32 %v1989_v44, %v1989_v44  ;;  %v146_v53 = vmul.f32 %v1991_v45, %v1991_v45 }
  0x97   :  { %v1999_v54 = vsub.f32 %v49_v8, %v115_v50  ;;  %v2001_v55 = vsub.f32 %v50_v9, %v116_v51  ;;  %v162_v56 = vsel %vm61_vm0, %v144_v52, 0.0  ;;  %v168_v59 = vsel %vm61_vm0, %v146_v53, 0.0  ;;  %v1659_v53 = vld [vmem:[%s2723_s5 + $0x8] sm:$0xff]  }
  0x98   :  { %166 = vadd.xlane.f32.xlu0 %v165_v49  ;;  %163 = vadd.xlane.f32.xlu1 %v162_v56  ;;  %v82_v57 = vpop.xlane.xlu0 %81  ;;  %v85_v58 = vpop.xlane.xlu1 %84  ;;  %v1660_v56 = vld [vmem:[%s2722_s3] sm:$0xff]  }
  0x99   :  { %v117_v60 = vmul.f32 0.03125, %v82_v57  ;;  %v118_v61 = vmul.f32 0.03125, %v85_v58  ;;  %v147_v62 = vmul.f32 %v1999_v54, %v1999_v54  ;;  %v148_v63 = vmul.f32 %v2001_v55, %v2001_v55  ;;  %1583 = vmatprep.subr.bf16.mxu1 %v1659_v53  ;;  %v1661_v57 = vld [vmem:[%s2723_s5] sm:$0xff]  }
  0x9a   :  { %1584 = vmatpush3.bf16.msra.mxu1 %v1659_v53 }
  0x9b   :  { %v2010_v0 = vsub.f32 %v1914_v12, %v117_v60  ;;  %v2013_v1 = vsub.f32 %v1919_v13, %v118_v61  ;;  %v171_v2 = vsel %vm61_vm0, %v147_v62, 0.0  ;;  %v174_v5 = vsel %vm61_vm0, %v148_v63, 0.0  ;;  %1585 = vmatprep.subr.bf16.mxu1 %v1661_v57 }
  0x9c   :  { %169 = vadd.xlane.f32.xlu1 %v168_v59  ;;  %172 = vadd.xlane.f32.xlu0 %v171_v2  ;;  %v88_v3 = vpop.xlane.xlu0 %87  ;;  %v91_v4 = vpop.xlane.xlu1 %90 }
  0x9d   :  { %v119_v6 = vmul.f32 0.03125, %v88_v3  ;;  %v120_v7 = vmul.f32 0.03125, %v91_v4  ;;  %v149_v8 = vmul.f32 %v2010_v0, %v2010_v0  ;;  %v150_v9 = vmul.f32 %v2013_v1, %v2013_v1 }
  0x9e   :  { %1586 = vmatpush3.bf16.msra.mxu1 %v1661_v57 }
  0x9f   :  { %v2022_v10 = vsub.f32 %v1928_v16, %v119_v6  ;;  %v2025_v11 = vsub.f32 %v1933_v17, %v120_v7  ;;  %v177_v12 = vsel %vm61_vm0, %v149_v8, 0.0  ;;  %v180_v15 = vsel %vm61_vm0, %v150_v9, 0.0 }
  0xa0   :  { %175 = vadd.xlane.f32.xlu1 %v174_v5  ;;  %178 = vadd.xlane.f32.xlu0 %v177_v12  ;;  %v94_v13 = vpop.xlane.xlu0 %93  ;;  %v97_v14 = vpop.xlane.xlu1 %96 }
  0xa1   :  { %v121_v18 = vmul.f32 0.03125, %v94_v13  ;;  %v122_v19 = vmul.f32 0.03125, %v97_v14  ;;  %v151_v22 = vmul.f32 %v2022_v10, %v2022_v10  ;;  %v152_v16 = vmul.f32 %v2025_v11, %v2025_v11 }
  0xa3   :  { %v2034_v23 = vsub.f32 %v1942_v20, %v121_v18  ;;  %v2037_v17 = vsub.f32 %v1947_v21, %v122_v19  ;;  %v183_v26 = vsel %vm61_vm0, %v151_v22, 0.0  ;;  %v186_v31 = vsel %vm61_vm0, %v152_v16, 0.0 }
  0xa4   :  { %181 = vadd.xlane.f32.xlu1 %v180_v15  ;;  %184 = vadd.xlane.f32.xlu0 %v183_v26  ;;  %v100_v27 = vpop.xlane.xlu0 %99  ;;  %v103_v30 = vpop.xlane.xlu1 %102 }
  0xa5   :  { %v123_v32 = vmul.f32 0.03125, %v100_v27  ;;  %v124_v33 = vmul.f32 0.03125, %v103_v30  ;;  %v153_v34 = vmul.f32 %v2034_v23, %v2034_v23  ;;  %v154_v20 = vmul.f32 %v2037_v17, %v2037_v17 }
  0xa7   :  { %v2046_v35 = vsub.f32 %v1956_v24, %v123_v32  ;;  %v2049_v21 = vsub.f32 %v1961_v25, %v124_v33  ;;  %v189_v38 = vsel %vm61_vm0, %v153_v34, 0.0  ;;  %v192_v41 = vsel %vm61_vm0, %v154_v20, 0.0  ;;  %v2087_v20 = vld [vmem:[%s2724_s1] ss:$0 sm:$0xff] }
  0xa8   :  { %187 = vadd.xlane.f32.xlu1 %v186_v31  ;;  %190 = vadd.xlane.f32.xlu0 %v189_v38  ;;  %v106_v39 = vpop.xlane.xlu0 %105  ;;  %v109_v40 = vpop.xlane.xlu1 %108 }
  0xa9   :  { %v125_v42 = vmul.f32 0.03125, %v106_v39  ;;  %v126_v43 = vmul.f32 0.03125, %v109_v40  ;;  %v155_v46 = vmul.f32 %v2046_v35, %v2046_v35  ;;  %v156_v24 = vmul.f32 %v2049_v21, %v2049_v21 }
  0xab   :  { %v2058_v47 = vsub.f32 %v1970_v28, %v125_v42  ;;  %v2061_v25 = vsub.f32 %v1975_v29, %v126_v43  ;;  %v195_v48 = vsel %vm61_vm0, %v155_v46, 0.0  ;;  %v198_v49 = vsel %vm61_vm0, %v156_v24, 0.0  ;;  %v1658_v29 = vld [vmem:[%s2722_s3 + $0x8] sm:$0xff]  }
  0xac   :  { %193 = vadd.xlane.f32.xlu1 %v192_v41  ;;  %196 = vadd.xlane.f32.xlu0 %v195_v48 }
  0xad   :  { %v157_v50 = vmul.f32 %v2058_v47, %v2058_v47  ;;  %v158_v51 = vmul.f32 %v2061_v25, %v2061_v25  ;;  %1563 = vmatprep.subr.bf16.mxu0 %v1658_v29 }
  0xae   :  { %1564 = vmatpush3.bf16.msra.mxu0 %v1658_v29 }
  0xaf   :  { %v201_v52 = vsel %vm61_vm0, %v157_v50, 0.0  ;;  %v204_v28 = vsel %vm61_vm0, %v158_v51, 0.0  ;;  %1565 = vmatprep.subr.bf16.mxu0 %v1660_v56 }
  0xb0   :  { %199 = vadd.xlane.f32.xlu1 %v198_v49  ;;  %202 = vadd.xlane.f32.xlu0 %v201_v52 }
  0xb2   :  { %1566 = vmatpush3.bf16.msra.mxu0 %v1660_v56 }
  0xb4   :  { %205 = vadd.xlane.f32.xlu1 %v204_v28 }
 0x11d   :  { %v161_v58 = vpop.xlane.xlu0 %160 }
 0x11e   :  { %v207_v59 = vmul.f32 0.03125, %v161_v58 }
 0x120   :  { %v223_v60 = vadd.f32 1e-05, %v207_v59 }
 0x121   :  { %v164_v61 = vpop.xlane.xlu1 %163  ;;  %v167_v62 = vpop.xlane.xlu0 %166 }
 0x122   :  { %1672 = vrsqrt.f32 %v223_v60  ;;  %v208_v63 = vmul.f32 0.03125, %v164_v61  ;;  %v209_v2 = vmul.f32 0.03125, %v167_v62 }
 0x124   :  { %v224_v3 = vadd.f32 1e-05, %v208_v63  ;;  %v225_v4 = vadd.f32 1e-05, %v209_v2 }
 0x125   :  { %v170_v5 = vpop.xlane.xlu1 %169  ;;  %v173_v6 = vpop.xlane.xlu0 %172 }
 0x126   :  { %1674 = vrsqrt.f32 %v224_v3  ;;  %v210_v7 = vmul.f32 0.03125, %v170_v5  ;;  %v211_v8 = vmul.f32 0.03125, %v173_v6 }
 0x127   :  { %1676 = vrsqrt.f32 %v225_v4 }
 0x128   :  { %v226_v9 = vadd.f32 1e-05, %v210_v7  ;;  %v227_v12 = vadd.f32 1e-05, %v211_v8 }
 0x129   :  { %v176_v13 = vpop.xlane.xlu1 %175  ;;  %v179_v14 = vpop.xlane.xlu0 %178 }
 0x12a   :  { %1678 = vrsqrt.f32 %v226_v9  ;;  %v212_v15 = vmul.f32 0.03125, %v176_v13  ;;  %v213_v18 = vmul.f32 0.03125, %v179_v14 }
 0x12b   :  { %1680 = vrsqrt.f32 %v227_v12 }
 0x12c   :  { %v228_v19 = vadd.f32 1e-05, %v212_v15  ;;  %v229_v22 = vadd.f32 1e-05, %v213_v18 }
 0x12d   :  { %v182_v16 = vpop.xlane.xlu1 %181  ;;  %v185_v26 = vpop.xlane.xlu0 %184 }
 0x12e   :  { %1682 = vrsqrt.f32 %v228_v19  ;;  %v214_v27 = vmul.f32 0.03125, %v182_v16  ;;  %v215_v30 = vmul.f32 0.03125, %v185_v26 }
 0x12f   :  { %v1673_v31 = vpop.eup %1672  ;;  %1684 = vrsqrt.f32 %v229_v22 }
 0x130   :  { %v230_v32 = vadd.f32 1e-05, %v214_v27  ;;  %v231_v33 = vadd.f32 1e-05, %v215_v30  ;;  %v255_v34 = vmul.f32 %v1673_v31, %v1981_v36  ;;  %v2094_v36 = vld [vmem:[%s2725_s2] ss:$0 sm:$0xff] }
 0x131   :  { %v188_v38 = vpop.xlane.xlu1 %187  ;;  %v191_v39 = vpop.xlane.xlu0 %190 }
 0x132   :  { %1686 = vrsqrt.f32 %v230_v32  ;;  %v216_v40 = vmul.f32 0.03125, %v188_v38  ;;  %v217_v41 = vmul.f32 0.03125, %v191_v39  ;;  %v278_v43 = vmul.f32 %v2087_v20, %v255_v34 }
 0x133   :  { %v1675_v42 = vpop.eup %1674  ;;  %1688 = vrsqrt.f32 %v231_v33 }
 0x134   :  { %v1677_v46 = vpop.eup %1676  ;;  %v232_v24 = vadd.f32 1e-05, %v216_v40  ;;  %v233_v48 = vadd.f32 1e-05, %v217_v41  ;;  %v256_v49 = vmul.f32 %v1675_v42, %v1989_v44  ;;  %v301_v57 = vadd.f32 %v2094_v36, %v278_v43 }
 0x135   :  { %v194_v50 = vpop.xlane.xlu1 %193  ;;  %v197_v51 = vpop.xlane.xlu0 %196  ;;  %v257_v52 = vmul.f32 %v1677_v46, %v1983_v37 }
 0x136   :  { %1690 = vrsqrt.f32 %v232_v24  ;;  %v218_v28 = vmul.f32 0.03125, %v194_v50  ;;  %v219_v29 = vmul.f32 0.03125, %v197_v51  ;;  %v279_v53 = vmul.f32 %v2087_v20, %v256_v49 }
 0x137   :  { %v1679_v56 = vpop.eup %1678  ;;  %1692 = vrsqrt.f32 %v233_v48  ;;  %v280_v37 = vmul.f32 %v2087_v20, %v257_v52 }
 0x138   :  { %v1681_v58 = vpop.eup %1680  ;;  %v234_v44 = vadd.f32 1e-05, %v218_v28  ;;  %v235_v59 = vadd.f32 1e-05, %v219_v29  ;;  %v302_v60 = vadd.f32 %v2094_v36, %v279_v53  ;;  %v258_v61 = vmul.f32 %v1679_v56, %v1991_v45 }
 0x139   :  { %v200_v62 = vpop.xlane.xlu1 %199  ;;  %v203_v63 = vpop.xlane.xlu0 %202  ;;  %v259_v2 = vmul.f32 %v1681_v58, %v1999_v54  ;;  %v303_v14 = vadd.f32 %v2094_v36, %v280_v37 }
 0x13a   :  { %1694 = vrsqrt.f32 %v234_v44  ;;  %v220_v3 = vmul.f32 0.03125, %v200_v62  ;;  %v221_v4 = vmul.f32 0.03125, %v203_v63  ;;  %v317_v5 = vpack.c.bf16 %v302_v60, %v301_v57 }
 0x13b   :  { %v1683_v6 = vpop.eup %1682  ;;  %1696 = vrsqrt.f32 %v235_v59  ;;  %v281_v7 = vmul.f32 %v2087_v20, %v258_v61  ;;  %v282_v13 = vmul.f32 %v2087_v20, %v259_v2 }
 0x13c   :  { %v1685_v8 = vpop.eup %1684  ;;  %v236_v9 = vadd.f32 1e-05, %v220_v3  ;;  %v237_v12 = vadd.f32 1e-05, %v221_v4  ;;  %1567 = vmatprep.mubr.msk.bf16.mxu0 %vm61_vm0, %v317_v5  ;;  %1587 = vmatprep.mubr.msk.bf16.mxu1 %vm61_vm0, %v317_v5  ;;  %v260_v45 = vmul.f32 %v1683_v6, %v2001_v55 }
 0x13d   :  { %v206_v54 = vpop.xlane.xlu1 %205  ;;  %v304_v15 = vadd.f32 %v2094_v36, %v281_v7  ;;  %v261_v18 = vmul.f32 %v1685_v8, %v2010_v0  ;;  %v305_v31 = vadd.f32 %v2094_v36, %v282_v13 }
 0x13e   :  { %1698 = vrsqrt.f32 %v236_v9  ;;  %v222_v19 = vmul.f32 0.03125, %v206_v54  ;;  %v283_v22 = vmul.f32 %v2087_v20, %v260_v45 }
 0x13f   :  { %v1687_v16 = vpop.eup %1686  ;;  %1700 = vrsqrt.f32 %v237_v12  ;;  %v318_v26 = vpack.c.bf16 %v304_v15, %v303_v14  ;;  %v284_v27 = vmul.f32 %v2087_v20, %v261_v18 }
 0x140   :  { %v1689_v30 = vpop.eup %1688  ;;  %v238_v55 = vadd.f32 1e-05, %v222_v19  ;;  %v306_v32 = vadd.f32 %v2094_v36, %v283_v22  ;;  %v262_v33 = vmul.f32 %v1687_v16, %v2013_v1 }
 0x141   :  { %1568 = vmatmul.mubr.msk.bf16.vlgmr.msra.gmra.mxu0 %vm61_vm0, %v318_v26  ;;  %1588 = vmatmul.mubr.msk.bf16.vlgmr.msra.gmra.mxu1 %vm61_vm0, %v318_v26  ;;  %v263_v0 = vmul.f32 %v1689_v30, %v2022_v10  ;;  %v307_v40 = vadd.f32 %v2094_v36, %v284_v27 }
 0x142   :  { %1702 = vrsqrt.f32 %v238_v55  ;;  %v319_v34 = vpack.c.bf16 %v306_v32, %v305_v31  ;;  %v285_v38 = vmul.f32 %v2087_v20, %v262_v33 }
 0x143   :  { %v1691_v39 = vpop.eup %1690  ;;  %v286_v43 = vmul.f32 %v2087_v20, %v263_v0 }
 0x144   :  { %v1693_v41 = vpop.eup %1692  ;;  %1571 = vmatprep.mubr.msk.bf16.mxu0 %vm61_vm0, %v319_v34  ;;  %1591 = vmatprep.mubr.msk.bf16.mxu1 %vm61_vm0, %v319_v34  ;;  %v308_v1 = vadd.f32 %v2094_v36, %v285_v38  ;;  %v264_v42 = vmul.f32 %v1691_v39, %v2025_v11 }
 0x145   :  { %v265_v10 = vmul.f32 %v1693_v41, %v2034_v23  ;;  %v309_v51 = vadd.f32 %v2094_v36, %v286_v43 }
 0x146   :  { %v320_v46 = vpack.c.bf16 %v308_v1, %v307_v40  ;;  %v287_v24 = vmul.f32 %v2087_v20, %v264_v42 }
 0x147   :  { %v1695_v48 = vpop.eup %1694  ;;  %v288_v49 = vmul.f32 %v2087_v20, %v265_v10 }
 0x148   :  { %v1697_v50 = vpop.eup %1696  ;;  %v310_v52 = vadd.f32 %v2094_v36, %v287_v24  ;;  %v266_v28 = vmul.f32 %v1695_v48, %v2037_v17 }
 0x149   :  { %1572 = vmatmul.mubr.msk.bf16.gmra.mxu0 %vm61_vm0, %v320_v46  ;;  %1592 = vmatmul.mubr.msk.bf16.gmra.mxu1 %vm61_vm0, %v320_v46  ;;  %v267_v11 = vmul.f32 %v1697_v50, %v2046_v35  ;;  %v311_v56 = vadd.f32 %v2094_v36, %v288_v49 }
 0x14a   :  { %v321_v23 = vpack.c.bf16 %v310_v52, %v309_v51  ;;  %v289_v29 = vmul.f32 %v2087_v20, %v266_v28 }
 0x14b   :  { %v1699_v53 = vpop.eup %1698  ;;  %v290_v44 = vmul.f32 %v2087_v20, %v267_v11 }
 0x14c   :  { %v1701_v57 = vpop.eup %1700  ;;  %1575 = vmatprep.mubr.msk.bf16.mxu0 %vm61_vm0, %v321_v23  ;;  %1595 = vmatprep.mubr.msk.bf16.mxu1 %vm61_vm0, %v321_v23  ;;  %v312_v58 = vadd.f32 %v2094_v36, %v289_v29  ;;  %v268_v17 = vmul.f32 %v1699_v53, %v2049_v21 }
 0x14d   :  { %v269_v59 = vmul.f32 %v1701_v57, %v2058_v47  ;;  %v313_v62 = vadd.f32 %v2094_v36, %v290_v44 }
 0x14e   :  { %v322_v35 = vpack.c.bf16 %v312_v58, %v311_v56  ;;  %v291_v60 = vmul.f32 %v2087_v20, %v268_v17 }
 0x14f   :  { %v1703_v61 = vpop.eup %1702  ;;  %v292_v2 = vmul.f32 %v2087_v20, %v269_v59 }
 0x150   :  { %v314_v63 = vadd.f32 %v2094_v36, %v291_v60  ;;  %v270_v37 = vmul.f32 %v1703_v61, %v2061_v25 }
 0x151   :  { %1576 = vmatmul.mubr.msk.bf16.gmra.mxu0 %vm61_vm0, %v322_v35  ;;  %1596 = vmatmul.mubr.msk.bf16.gmra.mxu1 %vm61_vm0, %v322_v35  ;;  %v315_v47 = vadd.f32 %v2094_v36, %v292_v2 }
 0x152   :  { %v323_v21 = vpack.c.bf16 %v314_v63, %v313_v62  ;;  %v293_v3 = vmul.f32 %v2087_v20, %v270_v37 }
 0x154   :  { %1579 = vmatprep.mubr.msk.bf16.mxu0 %vm61_vm0, %v323_v21  ;;  %1599 = vmatprep.mubr.msk.bf16.mxu1 %vm61_vm0, %v323_v21  ;;  %v316_v4 = vadd.f32 %v2094_v36, %v293_v3  ;;  %v1485_v36 = vld [vmem:[%s2726_s6] ss:$0 sm:$0xff] }
 0x156   :  { %v324_v5 = vpack.c.bf16 %v316_v4, %v315_v47 }
 0x159   :  { %1580 = vmatmul.mubr.msk.bf16.gmra.mxu0 %vm61_vm0, %v324_v5  ;;  %1600 = vmatmul.mubr.msk.bf16.gmra.mxu1 %vm61_vm0, %v324_v5 }
 0x201   :  { %v1589_v25 = vpop.f32.mrf.mxu1 }
 0x202   :  { %v2181_v49 = vadd.f32 %v1589_v25, %v1485_v36 }
 0x203   :  { %v526_v6 = vpop.f32.mrf.mxu1 }
 0x204   :  { %v687_v28 = vmul.f32 0.70710677, %v2181_v49  ;;  %v2188_v11 = vadd.f32 %v1485_v36, %v526_v6 }
 0x205   :  { %v1590_v7 = vpop.f32.mrf.mxu1 }
 0x206   :  { %v2190_v29 = vadd.f32 %v1590_v7, %v1485_v36  ;;  %v685_v59 = vmul.f32 0.70710677, %v2188_v11 }
 0x207   :  { %v2157_v8 = vpop.f32.mrf.mxu1 }
 0x208   :  { %v688_v63 = vmul.f32 0.70710677, %v2190_v29  ;;  %v2198_v37 = vadd.f32 %v1485_v36, %v2157_v8 }
 0x209   :  { %v1593_v9 = vpop.f32.mrf.mxu1 }
 0x20a   :  { %v2170_v40 = vadd.f32 %v1593_v9, %v1485_v36 }
 0x20b   :  { %v542_v20 = vpop.f32.mrf.mxu1 }
 0x20c   :  { %v2175_v10 = vadd.f32 %v1485_v36, %v542_v20  ;;  %v691_v46 = vmul.f32 0.70710677, %v2170_v40  ;;  %v686_v20 = vmul.f32 0.70710677, %v2198_v37 }
 0x20d   :  { %v1594_v12 = vpop.f32.mrf.mxu1 }
 0x20e   :  { %v2178_v24 = vadd.f32 %v1594_v12, %v1485_v36  ;;  %v689_v50 = vmul.f32 0.70710677, %v2175_v10 }
 0x20f   :  { %v545_v45 = vpop.f32.mrf.mxu1 }
 0x210   :  { %v692_v51 = vmul.f32 0.70710677, %v2178_v24  ;;  %v2185_v52 = vadd.f32 %v1485_v36, %v545_v45 }
 0x211   :  { %v1597_v13 = vpop.f32.mrf.mxu1 }
 0x212   :  { %v2162_v19 = vadd.f32 %v1597_v13, %v1485_v36  ;;  %v690_v53 = vmul.f32 0.70710677, %v2185_v52 }
 0x213   :  { %v558_v54 = vpop.f32.mrf.mxu1 }
 0x214   :  { %v2164_v26 = vadd.f32 %v1485_v36, %v558_v54  ;;  %v695_v30 = vmul.f32 0.70710677, %v2162_v19  ;;  %v679_v6 = vmul.f32 0.5, %v2162_v19 }
 0x215   :  { %v1598_v14 = vpop.f32.mrf.mxu1 }
 0x216   :  { %v2167_v55 = vadd.f32 %v1598_v14, %v1485_v36  ;;  %v693_v0 = vmul.f32 0.70710677, %v2164_v26  ;;  %v677_v19 = vmul.f32 0.5, %v2164_v26 }
 0x217   :  { %v561_v15 = vpop.f32.mrf.mxu1 }
 0x218   :  { %v696_v41 = vmul.f32 0.70710677, %v2167_v55  ;;  %v2173_v1 = vadd.f32 %v1485_v36, %v561_v15 }
 0x219   :  { %v1601_v18 = vpop.f32.mrf.mxu1 }
 0x21a   :  { %v583_v22 = vadd.f32 %v1601_v18, %v1485_v36  ;;  %v694_v48 = vmul.f32 0.70710677, %v2173_v1 }
 0x21b   :  { %v574_v16 = vpop.f32.mrf.mxu1 }
 0x21c   :  { %v699_v31 = vmul.f32 0.70710677, %v583_v22  ;;  %v575_v32 = vadd.f32 %v1485_v36, %v574_v16  ;;  %v683_v57 = vmul.f32 0.5, %v583_v22  ;;  %v680_v22 = vmul.f32 0.5, %v2167_v55 }
 0x21d   :  { %v1602_v27 = vpop.f32.mrf.mxu1  ;;  %v675_v55 = vmul.f32 0.5, %v2170_v40  ;;  %v676_v40 = vmul.f32 0.5, %v2178_v24 }
 0x21e   :  { %v586_v34 = vadd.f32 %v1602_v27, %v1485_v36  ;;  %1704 = verf.f32 %v699_v31  ;;  %v697_v38 = vmul.f32 0.70710677, %v575_v32  ;;  %v681_v35 = vmul.f32 0.5, %v575_v32 }
 0x21f   :  { %v577_v33 = vpop.f32.mrf.mxu1  ;;  %1706 = verf.f32 %v695_v30 }
 0x220   :  { %v578_v39 = vadd.f32 %v1485_v36, %v577_v33  ;;  %1708 = verf.f32 %v697_v38  ;;  %v700_v42 = vmul.f32 0.70710677, %v586_v34  ;;  %v684_v3 = vmul.f32 0.5, %v586_v34 }
 0x221   :  { %1710 = verf.f32 %v693_v0  ;;  %v678_v38 = vmul.f32 0.5, %v2173_v1 }
 0x222   :  { %v698_v43 = vmul.f32 0.70710677, %v578_v39  ;;  %1712 = verf.f32 %v700_v42  ;;  %v682_v7 = vmul.f32 0.5, %v578_v39 }
 0x223   :  { %1714 = verf.f32 %v696_v41 }
 0x224   :  { %1716 = verf.f32 %v698_v43 }
 0x225   :  { %1718 = verf.f32 %v691_v46 }
 0x226   :  { %1720 = verf.f32 %v694_v48 }
 0x227   :  { %1722 = verf.f32 %v689_v50 }
 0x228   :  { %1724 = verf.f32 %v692_v51  ;;  %v673_v51 = vmul.f32 0.5, %v2175_v10  ;;  %v674_v10 = vmul.f32 0.5, %v2185_v52 }
 0x229   :  { %1726 = verf.f32 %v687_v28 }
 0x22a   :  { %1728 = verf.f32 %v690_v53 }
 0x22b   :  { %v1705_v23 = vpop.eup %1704  ;;  %1730 = verf.f32 %v685_v59 }
 0x22c   :  { %v1707_v56 = vpop.eup %1706  ;;  %v731_v58 = vadd.f32 1.0, %v1705_v23  ;;  %1732 = verf.f32 %v688_v63 }
 0x22d   :  { %v1709_v17 = vpop.eup %1708  ;;  %v727_v2 = vadd.f32 1.0, %v1707_v56  ;;  %1734 = verf.f32 %v686_v20 }
 0x22e   :  { %v1711_v44 = vpop.eup %1710  ;;  %v2194_v60 = vmul.f32 %v731_v58, %v683_v57  ;;  %v729_v61 = vadd.f32 1.0, %v1709_v17 }
 0x22f   :  { %v1713_v62 = vpop.eup %1712  ;;  %v2208_v12 = vmul.f32 %v727_v2, %v679_v6  ;;  %v725_v45 = vadd.f32 1.0, %v1711_v44  ;;  %v671_v44 = vmul.f32 0.5, %v2181_v49  ;;  %v669_v49 = vmul.f32 0.5, %v2188_v11 }
 0x230   :  { %v1715_v21 = vpop.eup %1714  ;;  %v791_v47 = vsel %vm61_vm0, %v2194_v60, 0.0  ;;  %v732_v4 = vadd.f32 1.0, %v1713_v62  ;;  %v2202_v5 = vmul.f32 %v729_v61, %v681_v35  ;;  %v670_v6 = vmul.f32 0.5, %v2198_v37 }
 0x231   :  { %v1717_v25 = vpop.eup %1716  ;;  %792 = vadd.xlane.f32.xlu0 %v791_v47  ;;  %v728_v36 = vadd.f32 1.0, %v1715_v21  ;;  %v779_v27 = vsel %vm61_vm0, %v2208_v12, 0.0  ;;  %v2224_v0 = vmul.f32 %v725_v45, %v677_v19  ;;  %v672_v21 = vmul.f32 0.5, %v2190_v29 }
 0x232   :  { %v2205_v9 = vmul.f32 %v732_v4, %v684_v3  ;;  %v730_v8 = vadd.f32 1.0, %v1717_v25  ;;  %v1719_v13 = vpop.eup %1718  ;;  %v785_v14 = vsel %vm61_vm0, %v2202_v5, 0.0 }
 0x233   :  { %v1721_v18 = vpop.eup %1720  ;;  %v723_v30 = vadd.f32 1.0, %v1719_v13  ;;  %v2222_v33 = vmul.f32 %v728_v36, %v680_v22  ;;  %v773_v46 = vsel %vm61_vm0, %v2224_v0, 0.0 }
 0x234   :  { %v794_v54 = vsel %vm61_vm0, %v2205_v9, 0.0  ;;  %v2214_v15 = vmul.f32 %v730_v8, %v682_v7  ;;  %v1723_v16 = vpop.eup %1722  ;;  %v726_v34 = vadd.f32 1.0, %v1721_v18 }
 0x235   :  { %795 = vadd.xlane.f32.xlu1 %v794_v54  ;;  %786 = vadd.xlane.f32.xlu0 %v785_v14  ;;  %v1725_v31 = vpop.eup %1724  ;;  %v721_v41 = vadd.f32 1.0, %v1723_v16  ;;  %v782_v43 = vsel %vm61_vm0, %v2222_v33, 0.0  ;;  %v2234_v50 = vmul.f32 %v723_v30, %v675_v55 }
 0x236   :  { %v788_v32 = vsel %vm61_vm0, %v2214_v15, 0.0  ;;  %v1727_v26 = vpop.eup %1726  ;;  %v724_v39 = vadd.f32 1.0, %v1725_v31  ;;  %v2232_v48 = vmul.f32 %v726_v34, %v678_v38 }
 0x237   :  { %v1729_v42 = vpop.eup %1728  ;;  %v719_v23 = vadd.f32 1.0, %v1727_v26  ;;  %v767_v57 = vsel %vm61_vm0, %v2234_v50, 0.0  ;;  %v2244_v17 = vmul.f32 %v721_v41, %v673_v51 }
 0x238   :  { %v1731_v1 = vpop.eup %1730  ;;  %v722_v28 = vadd.f32 1.0, %v1729_v42  ;;  %v776_v56 = vsel %vm61_vm0, %v2232_v48, 0.0  ;;  %v2242_v58 = vmul.f32 %v724_v39, %v676_v40 }
 0x239   :  { %789 = vadd.xlane.f32.xlu1 %v788_v32  ;;  %780 = vadd.xlane.f32.xlu0 %v779_v27  ;;  %v1733_v53 = vpop.eup %1732  ;;  %v2248_v24 = vmul.f32 %v719_v23, %v671_v44  ;;  %v761_v62 = vsel %vm61_vm0, %v2244_v17, 0.0  ;;  %v717_v2 = vadd.f32 1.0, %v1731_v1 }
 0x23a   :  { %v720_v59 = vadd.f32 1.0, %v1733_v53  ;;  %v1735_v35 = vpop.eup %1734  ;;  %v770_v61 = vsel %vm61_vm0, %v2242_v58, 0.0  ;;  %v2254_v63 = vmul.f32 %v722_v28, %v674_v10 }
 0x23b   :  { %v755_v52 = vsel %vm61_vm0, %v2248_v24, 0.0  ;;  %v2264_v4 = vmul.f32 %v717_v2, %v669_v49  ;;  %v718_v25 = vadd.f32 1.0, %v1735_v35 }
 0x23c   :  { %v764_v3 = vsel %vm61_vm0, %v2254_v63, 0.0  ;;  %v2262_v47 = vmul.f32 %v720_v59, %v672_v21 }
 0x23d   :  { %783 = vadd.xlane.f32.xlu1 %v782_v43  ;;  %774 = vadd.xlane.f32.xlu0 %v773_v46  ;;  %v749_v29 = vsel %vm61_vm0, %v2264_v4, 0.0  ;;  %v2271_v7 = vmul.f32 %v718_v25, %v670_v6 }
 0x23e   :  { %v758_v11 = vsel %vm61_vm0, %v2262_v47, 0.0 }
 0x23f   :  { %v752_v8 = vsel %vm61_vm0, %v2271_v7, 0.0 }
 0x241   :  { %777 = vadd.xlane.f32.xlu1 %v776_v56  ;;  %768 = vadd.xlane.f32.xlu0 %v767_v57 }
 0x245   :  { %771 = vadd.xlane.f32.xlu1 %v770_v61  ;;  %762 = vadd.xlane.f32.xlu0 %v761_v62 }
 0x249   :  { %765 = vadd.xlane.f32.xlu1 %v764_v3  ;;  %756 = vadd.xlane.f32.xlu0 %v755_v52 }
 0x24d   :  { %759 = vadd.xlane.f32.xlu1 %v758_v11  ;;  %750 = vadd.xlane.f32.xlu0 %v749_v29 }
 0x251   :  { %753 = vadd.xlane.f32.xlu1 %v752_v8 }
 0x2ba   :  { %v793_v20 = vpop.xlane.xlu0 %792 }
 0x2bb   :  { %v811_v45 = vmul.f32 0.03125, %v793_v20 }
 0x2bd   :  { %v2276_v13 = vsub.f32 %v2194_v60, %v811_v45 }
 0x2be   :  { %v796_v37 = vpop.xlane.xlu1 %795  ;;  %v787_v54 = vpop.xlane.xlu0 %786 }
 0x2bf   :  { %v812_v14 = vmul.f32 0.03125, %v796_v37  ;;  %v809_v36 = vmul.f32 0.03125, %v787_v54  ;;  %v843_v18 = vmul.f32 %v2276_v13, %v2276_v13 }
 0x2c1   :  { %v2281_v19 = vsub.f32 %v2205_v9, %v812_v14  ;;  %v2284_v22 = vsub.f32 %v2202_v5, %v809_v36  ;;  %v887_v16 = vsel %vm61_vm0, %v843_v18, 0.0 }
 0x2c2   :  { %v790_v27 = vpop.xlane.xlu1 %789  ;;  %888 = vadd.xlane.f32.xlu0 %v887_v16  ;;  %v781_v30 = vpop.xlane.xlu0 %780 }
 0x2c3   :  { %v810_v60 = vmul.f32 0.03125, %v790_v27  ;;  %v807_v31 = vmul.f32 0.03125, %v781_v30  ;;  %v844_v32 = vmul.f32 %v2281_v19, %v2281_v19  ;;  %v841_v34 = vmul.f32 %v2284_v22, %v2284_v22 }
 0x2c5   :  { %v2292_v26 = vsub.f32 %v2214_v15, %v810_v60  ;;  %v2295_v9 = vsub.f32 %v2208_v12, %v807_v31  ;;  %v890_v5 = vsel %vm61_vm0, %v844_v32, 0.0  ;;  %v881_v55 = vsel %vm61_vm0, %v841_v34, 0.0 }
 0x2c6   :  { %891 = vadd.xlane.f32.xlu1 %v890_v5  ;;  %v784_v38 = vpop.xlane.xlu1 %783  ;;  %882 = vadd.xlane.f32.xlu0 %v881_v55  ;;  %v775_v39 = vpop.xlane.xlu0 %774 }
 0x2c7   :  { %v808_v41 = vmul.f32 0.03125, %v784_v38  ;;  %v805_v42 = vmul.f32 0.03125, %v775_v39  ;;  %v842_v43 = vmul.f32 %v2292_v26, %v2292_v26  ;;  %v839_v15 = vmul.f32 %v2295_v9, %v2295_v9  ;;  %v1662_v39 = vld [vmem:[%s2727_s7] sm:$0xff]  }
 0x2c8   :  { %1619 = vmatprep.mubr.bf16.mxu0 %v1662_v39 }
 0x2c9   :  { %v2304_v46 = vsub.f32 %v2222_v33, %v808_v41  ;;  %v2307_v12 = vsub.f32 %v2224_v0, %v805_v42  ;;  %v884_v51 = vsel %vm61_vm0, %v842_v43, 0.0  ;;  %v875_v40 = vsel %vm61_vm0, %v839_v15, 0.0  ;;  %v1029_v42 = vld [vmem:[%s2728_s8 + $0x10] sm:$0xff]  ;;  %v1030_v43 = vld [vmem:[%s2728_s8 + $0x18] sm:$0xff]  ;;  %v1027_v15 = vld [vmem:[%s2728_s8] sm:$0xff] }
 0x2ca   :  { %885 = vadd.xlane.f32.xlu1 %v884_v51  ;;  %v778_v1 = vpop.xlane.xlu1 %777  ;;  %876 = vadd.xlane.f32.xlu0 %v875_v40  ;;  %v769_v28 = vpop.xlane.xlu0 %768  ;;  %v1816_v41 = vmov 0   ;;  %v1036_v51 = vld [vmem:[%s2728_s8 + $0x48] sm:$0xff]  ;;  %v1031_v40 = vld [vmem:[%s2728_s8 + $0x20] sm:$0xff] }
 0x2cb   :  { %v806_v23 = vmul.f32 0.03125, %v778_v1  ;;  %v803_v53 = vmul.f32 0.03125, %v769_v28  ;;  %v840_v56 = vmul.f32 %v2304_v46, %v2304_v46  ;;  %v837_v33 = vmul.f32 %v2307_v12, %v2307_v12  ;;  %1657 = vset.pattern.permute.xlu1 %v1816_v41  ;;  %1656 = vset.pattern.permute.xlu0 %v1816_v41  ;;  %v1038_v1 = vld [vmem:[%s2728_s8 + $0x58] sm:$0xff]  ;;  %v1032_v28 = vld [vmem:[%s2728_s8 + $0x28] sm:$0xff]  ;;  %v2432_v41 = vld [vmem:[%s2730_s9] ss:$0 sm:$0xff] }
 0x2cd   :  { %v2316_v57 = vsub.f32 %v2232_v48, %v806_v23  ;;  %v2319_v0 = vsub.f32 %v2234_v50, %v803_v53  ;;  %v878_v44 = vsel %vm61_vm0, %v840_v56, 0.0  ;;  %v869_v10 = vsel %vm61_vm0, %v837_v33, 0.0  ;;  %v1040_v23 = vld [vmem:[%s2728_s8 + $0x68] sm:$0xff]  ;;  %v1033_v53 = vld [vmem:[%s2728_s8 + $0x30] sm:$0xff]  ;;  %v1042_v56 = vld [vmem:[%s2728_s8 + $0x78] sm:$0xff] }
 0x2ce   :  { %879 = vadd.xlane.f32.xlu1 %v878_v44  ;;  %v772_v59 = vpop.xlane.xlu1 %771  ;;  %870 = vadd.xlane.f32.xlu0 %v869_v10  ;;  %v763_v35 = vpop.xlane.xlu0 %762  ;;  %v1034_v33 = vld [vmem:[%s2728_s8 + $0x38] sm:$0xff]  ;;  %v1670_v44 = vld [vmem:[%s2729_s11 + $0x8] sm:$0xff]   ;;  %v1035_v10 = vld [vmem:[%s2728_s8 + $0x40] sm:$0xff] }
 0x2cf   :  { %v804_v61 = vmul.f32 0.03125, %v772_v59  ;;  %v801_v62 = vmul.f32 0.03125, %v763_v35  ;;  %v838_v2 = vmul.f32 %v2316_v57, %v2316_v57  ;;  %v835_v48 = vmul.f32 %v2319_v0, %v2319_v0  ;;  %1635 = vmatprep.subr.bf16.mxu1 %v1670_v44  ;;  %v1037_v59 = vld [vmem:[%s2728_s8 + $0x50] sm:$0xff]  ;;  %v1039_v35 = vld [vmem:[%s2728_s8 + $0x60] sm:$0xff] }
 0x2d0   :  { %1636 = vmatpush3.bf16.msra.mxu1 %v1670_v44 }
 0x2d1   :  { %v2328_v49 = vsub.f32 %v2242_v58, %v804_v61  ;;  %v2331_v50 = vsub.f32 %v2244_v17, %v801_v62  ;;  %v872_v21 = vsel %vm61_vm0, %v838_v2, 0.0  ;;  %v863_v52 = vsel %vm61_vm0, %v835_v48, 0.0  ;;  %v1671_v61 = vld [vmem:[%s2729_s11] sm:$0xff]   ;;  %v1041_v62 = vld [vmem:[%s2728_s8 + $0x70] sm:$0xff] }
 0x2d2   :  { %873 = vadd.xlane.f32.xlu1 %v872_v21  ;;  %v766_v3 = vpop.xlane.xlu1 %765  ;;  %864 = vadd.xlane.f32.xlu0 %v863_v52  ;;  %v757_v25 = vpop.xlane.xlu0 %756 }
 0x2d3   :  { %v802_v6 = vmul.f32 0.03125, %v766_v3  ;;  %v799_v11 = vmul.f32 0.03125, %v757_v25  ;;  %v836_v29 = vmul.f32 %v2328_v49, %v2328_v49  ;;  %v833_v58 = vmul.f32 %v2331_v50, %v2331_v50  ;;  %1637 = vmatprep.subr.bf16.mxu1 %v1671_v61 }
 0x2d4   :  { %1638 = vmatpush3.bf16.msra.mxu1 %v1671_v61 }
 0x2d5   :  { %v2340_v8 = vsub.f32 %v2254_v63, %v802_v6  ;;  %v2343_v17 = vsub.f32 %v2248_v24, %v799_v11  ;;  %v866_v20 = vsel %vm61_vm0, %v836_v29, 0.0  ;;  %v857_v45 = vsel %vm61_vm0, %v833_v58, 0.0 }
 0x2d6   :  { %867 = vadd.xlane.f32.xlu1 %v866_v20  ;;  %v760_v37 = vpop.xlane.xlu1 %759  ;;  %858 = vadd.xlane.f32.xlu0 %v857_v45  ;;  %v751_v54 = vpop.xlane.xlu0 %750 }
 0x2d7   :  { %v800_v14 = vmul.f32 0.03125, %v760_v37  ;;  %v797_v36 = vmul.f32 0.03125, %v751_v54  ;;  %v834_v18 = vmul.f32 %v2340_v8, %v2340_v8  ;;  %v831_v63 = vmul.f32 %v2343_v17, %v2343_v17 }
 0x2d9   :  { %v2352_v16 = vsub.f32 %v2262_v47, %v800_v14  ;;  %v2355_v24 = vsub.f32 %v2264_v4, %v797_v36  ;;  %v860_v27 = vsel %vm61_vm0, %v834_v18, 0.0  ;;  %v851_v30 = vsel %vm61_vm0, %v831_v63, 0.0 }
 0x2da   :  { %861 = vadd.xlane.f32.xlu1 %v860_v27  ;;  %v754_v60 = vpop.xlane.xlu1 %753  ;;  %852 = vadd.xlane.f32.xlu0 %v851_v30 }
 0x2db   :  { %v798_v31 = vmul.f32 0.03125, %v754_v60  ;;  %v832_v32 = vmul.f32 %v2352_v16, %v2352_v16  ;;  %v829_v34 = vmul.f32 %v2355_v24, %v2355_v24 }
 0x2dd   :  { %v2364_v47 = vsub.f32 %v2271_v7, %v798_v31  ;;  %v854_v4 = vsel %vm61_vm0, %v832_v32, 0.0  ;;  %v845_v5 = vsel %vm61_vm0, %v829_v34, 0.0  ;;  %v1028_v7 = vld [vmem:[%s2728_s8 + $0x8] sm:$0xff] }
 0x2de   :  { %855 = vadd.xlane.f32.xlu1 %v854_v4  ;;  %846 = vadd.xlane.f32.xlu0 %v845_v5 }
 0x2df   :  { %v830_v55 = vmul.f32 %v2364_v47, %v2364_v47 }
 0x2e1   :  { %v848_v38 = vsel %vm61_vm0, %v830_v55, 0.0 }
 0x2e2   :  { %849 = vadd.xlane.f32.xlu1 %v848_v38 }
 0x2f3   :  { %1050 = vperm.xlu1 %1657, %v1028_v7  }
 0x2f4   :  { %1045 = vperm.xlu0 %1656, %v1027_v15  }
 0x2f7   :  { %1055 = vperm.xlu1 %1657, %v1029_v42  }
 0x2f8   :  { %1090 = vperm.xlu0 %1656, %v1036_v51  }
 0x2fb   :  { %1060 = vperm.xlu1 %1657, %v1030_v43  }
 0x2fc   :  { %1100 = vperm.xlu0 %1656, %v1038_v1  }
 0x2ff   :  { %1065 = vperm.xlu1 %1657, %v1031_v40  }
 0x300   :  { %1110 = vperm.xlu0 %1656, %v1040_v23  }
 0x303   :  { %1070 = vperm.xlu1 %1657, %v1032_v28  }
 0x304   :  { %1120 = vperm.xlu0 %1656, %v1042_v56  }
 0x307   :  { %1075 = vperm.xlu1 %1657, %v1033_v53  }
 0x30b   :  { %1080 = vperm.xlu1 %1657, %v1034_v33  }
 0x30f   :  { %1085 = vperm.xlu1 %1657, %v1035_v10  }
 0x313   :  { %1095 = vperm.xlu1 %1657, %v1037_v59  }
 0x317   :  { %1105 = vperm.xlu1 %1657, %v1039_v35  }
 0x31b   :  { %1115 = vperm.xlu1 %1657, %v1041_v62  }
 0x34b   :  { %v889_v2 = vpop.xlane.xlu0 %888 }
 0x34c   :  { %v907_v48 = vmul.f32 0.03125, %v889_v2 }
 0x34e   :  { %v923_v21 = vadd.f32 1e-05, %v907_v48 }
 0x34f   :  { %v892_v52 = vpop.xlane.xlu1 %891  ;;  %v883_v3 = vpop.xlane.xlu0 %882 }
 0x350   :  { %1736 = vrsqrt.f32 %v923_v21  ;;  %v908_v25 = vmul.f32 0.03125, %v892_v52  ;;  %v905_v6 = vmul.f32 0.03125, %v883_v3 }
 0x352   :  { %v924_v11 = vadd.f32 1e-05, %v908_v25  ;;  %v921_v29 = vadd.f32 1e-05, %v905_v6 }
 0x353   :  { %v886_v58 = vpop.xlane.xlu1 %885  ;;  %v877_v20 = vpop.xlane.xlu0 %876 }
 0x354   :  { %1738 = vrsqrt.f32 %v924_v11  ;;  %v906_v45 = vmul.f32 0.03125, %v886_v58  ;;  %v903_v37 = vmul.f32 0.03125, %v877_v20 }
 0x355   :  { %1740 = vrsqrt.f32 %v921_v29 }
 0x356   :  { %v922_v54 = vadd.f32 1e-05, %v906_v45  ;;  %v919_v14 = vadd.f32 1e-05, %v903_v37 }
 0x357   :  { %v880_v36 = vpop.xlane.xlu1 %879  ;;  %v871_v18 = vpop.xlane.xlu0 %870 }
 0x358   :  { %1742 = vrsqrt.f32 %v922_v54  ;;  %v904_v63 = vmul.f32 0.03125, %v880_v36  ;;  %v901_v27 = vmul.f32 0.03125, %v871_v18 }
 0x359   :  { %1744 = vrsqrt.f32 %v919_v14 }
 0x35a   :  { %v920_v30 = vadd.f32 1e-05, %v904_v63  ;;  %v917_v60 = vadd.f32 1e-05, %v901_v27 }
 0x35b   :  { %v874_v31 = vpop.xlane.xlu1 %873  ;;  %v865_v32 = vpop.xlane.xlu0 %864 }
 0x35c   :  { %1746 = vrsqrt.f32 %v920_v30  ;;  %v902_v34 = vmul.f32 0.03125, %v874_v31  ;;  %v899_v4 = vmul.f32 0.03125, %v865_v32 }
 0x35d   :  { %v1737_v5 = vpop.eup %1736  ;;  %1748 = vrsqrt.f32 %v917_v60 }
 0x35e   :  { %v918_v55 = vadd.f32 1e-05, %v902_v34  ;;  %v915_v38 = vadd.f32 1e-05, %v899_v4  ;;  %v955_v39 = vmul.f32 %v1737_v5, %v2276_v13  ;;  %v2439_v13 = vld [vmem:[%s2731_s10] ss:$0 sm:$0xff] }
 0x35f   :  { %v868_v7 = vpop.xlane.xlu1 %867  ;;  %v859_v42 = vpop.xlane.xlu0 %858 }
 0x360   :  { %1750 = vrsqrt.f32 %v918_v55  ;;  %v900_v43 = vmul.f32 0.03125, %v868_v7  ;;  %v897_v15 = vmul.f32 0.03125, %v859_v42  ;;  %v978_v40 = vmul.f32 %v2432_v41, %v955_v39 }
 0x361   :  { %v1739_v51 = vpop.eup %1738  ;;  %1752 = vrsqrt.f32 %v915_v38 }
 0x362   :  { %v1741_v1 = vpop.eup %1740  ;;  %v916_v28 = vadd.f32 1e-05, %v900_v43  ;;  %v913_v23 = vadd.f32 1e-05, %v897_v15  ;;  %v956_v53 = vmul.f32 %v1739_v51, %v2281_v19  ;;  %v1001_v62 = vadd.f32 %v2439_v13, %v978_v40 }
 0x363   :  { %v862_v56 = vpop.xlane.xlu1 %861  ;;  %v853_v33 = vpop.xlane.xlu0 %852  ;;  %v953_v44 = vmul.f32 %v1741_v1, %v2284_v22 }
 0x364   :  { %1754 = vrsqrt.f32 %v916_v28  ;;  %v898_v10 = vmul.f32 0.03125, %v862_v56  ;;  %v895_v59 = vmul.f32 0.03125, %v853_v33  ;;  %v979_v35 = vmul.f32 %v2432_v41, %v956_v53 }
 0x365   :  { %v1743_v61 = vpop.eup %1742  ;;  %1756 = vrsqrt.f32 %v913_v23  ;;  %v976_v22 = vmul.f32 %v2432_v41, %v953_v44 }
 0x366   :  { %v1745_v2 = vpop.eup %1744  ;;  %v914_v19 = vadd.f32 1e-05, %v898_v10  ;;  %v911_v48 = vadd.f32 1e-05, %v895_v59  ;;  %v1002_v21 = vadd.f32 %v2439_v13, %v979_v35  ;;  %v954_v52 = vmul.f32 %v1743_v61, %v2292_v26 }
 0x367   :  { %v856_v3 = vpop.xlane.xlu1 %855  ;;  %v847_v25 = vpop.xlane.xlu0 %846  ;;  %v951_v6 = vmul.f32 %v1745_v2, %v2295_v9  ;;  %v999_v9 = vadd.f32 %v2439_v13, %v976_v22 }
 0x368   :  { %1758 = vrsqrt.f32 %v914_v19  ;;  %v896_v11 = vmul.f32 0.03125, %v856_v3  ;;  %v893_v29 = vmul.f32 0.03125, %v847_v25  ;;  %v1026_v58 = vpack.c.bf16 %v1002_v21, %v1001_v62 }
 0x369   :  { %v1747_v20 = vpop.eup %1746  ;;  %1760 = vrsqrt.f32 %v911_v48  ;;  %v977_v45 = vmul.f32 %v2432_v41, %v954_v52  ;;  %v974_v37 = vmul.f32 %v2432_v41, %v951_v6 }
 0x36a   :  { %v1749_v54 = vpop.eup %1748  ;;  %v912_v14 = vadd.f32 1e-05, %v896_v11  ;;  %v909_v36 = vadd.f32 1e-05, %v893_v29  ;;  %1603 = vmatprep.subr.bf16.mxu0 %v1026_v58  ;;  %v952_v26 = vmul.f32 %v1747_v20, %v2304_v46  ;;  %v1663_v20 = vld [vmem:[%s2727_s7 + $0x8] sm:$0xff]  }
 0x36b   :  { %v850_v18 = vpop.xlane.xlu1 %849  ;;  %1604 = vmatpush3.bf16.msra.mxu0 %v1026_v58  ;;  %v1000_v63 = vadd.f32 %v2439_v13, %v977_v45  ;;  %v949_v27 = vmul.f32 %v1749_v54, %v2307_v12  ;;  %v997_v34 = vadd.f32 %v2439_v13, %v974_v37  ;;  %v1667_v45 = vld [vmem:[%s2727_s7 + $0x28] sm:$0xff]   ;;  %v1668_v37 = vld [vmem:[%s2727_s7 + $0x30] sm:$0xff]   ;;  %v1669_v54 = vld [vmem:[%s2727_s7 + $0x38] sm:$0xff]  }
 0x36c   :  { %1762 = vrsqrt.f32 %v912_v14  ;;  %v894_v30 = vmul.f32 0.03125, %v850_v18  ;;  %v975_v60 = vmul.f32 %v2432_v41, %v952_v26  ;;  %v1569_v14 = vpop.f32.mrf.mxu0 }
 0x36d   :  { %v1751_v31 = vpop.eup %1750  ;;  %1764 = vrsqrt.f32 %v909_v36  ;;  %v1025_v32 = vpack.c.bf16 %v1000_v63, %v999_v9  ;;  %v972_v38 = vmul.f32 %v2432_v41, %v949_v27 }
 0x36e   :  { %v1753_v4 = vpop.eup %1752  ;;  %v910_v5 = vadd.f32 1e-05, %v894_v30  ;;  %v998_v46 = vadd.f32 %v2439_v13, %v975_v60  ;;  %v950_v55 = vmul.f32 %v1751_v31, %v2316_v57  ;;  %v406_v36 = vpop.f32.mrf.mxu0 }
 0x36f   :  { %1605 = vmatprep.subr.bf16.mxu0 %v1025_v32  ;;  %v947_v12 = vmul.f32 %v1753_v4, %v2319_v0  ;;  %v995_v15 = vadd.f32 %v2439_v13, %v972_v38  ;;  %v2507_v60 = vpop.permute.xlu1 %1050  ;;  %v1474_v4 = vld [vmem:[%s2732_s4] ss:$0 sm:$0xff] }
 0x370   :  { %1766 = vrsqrt.f32 %v910_v5  ;;  %1606 = vmatpush3.bf16.msra.mxu0 %v1025_v32  ;;  %v1024_v39 = vpack.c.bf16 %v998_v46, %v997_v34  ;;  %v973_v7 = vmul.f32 %v2432_v41, %v950_v55  ;;  %v1570_v26 = vpop.f32.mrf.mxu0  ;;  %v407_v5 = vadd.f32 %v1474_v4, %v406_v36 }
 0x371   :  { %v1755_v42 = vpop.eup %1754  ;;  %v970_v57 = vmul.f32 %v2432_v41, %v947_v12  ;;  %v418_v46 = vadd.f32 %v1570_v26, %v1474_v4  ;;  %v2514_v12 = vadd.f32 %v1569_v14, %v1474_v4 }
 0x372   :  { %v1757_v43 = vpop.eup %1756  ;;  %1607 = vmatprep.subr.bf16.mxu0 %v1024_v39  ;;  %v996_v51 = vadd.f32 %v2439_v13, %v973_v7  ;;  %v948_v40 = vmul.f32 %v1755_v42, %v2328_v49  ;;  %v409_v18 = vpop.f32.mrf.mxu0 }
 0x373   :  { %v945_v1 = vmul.f32 %v1757_v43, %v2331_v50  ;;  %v993_v56 = vadd.f32 %v2439_v13, %v970_v57  ;;  %v2509_v34 = vpop.permute.xlu1 %1055  ;;  %v410_v38 = vadd.f32 %v1474_v4, %v409_v18  ;;  %v608_v42 = vmul.f32 0.70710677, %v418_v46 }
 0x374   :  { %1608 = vmatpush3.bf16.msra.mxu0 %v1024_v39  ;;  %v1023_v0 = vpack.c.bf16 %v996_v51, %v995_v15  ;;  %v971_v28 = vmul.f32 %v2432_v41, %v948_v40  ;;  %v1573_v9 = vpop.f32.mrf.mxu0  ;;  %v605_v39 = vmul.f32 0.70710677, %v407_v5  ;;  %v607_v51 = vmul.f32 0.70710677, %v2514_v12 }
 0x375   :  { %v1759_v23 = vpop.eup %1758  ;;  %v968_v10 = vmul.f32 %v2432_v41, %v945_v1  ;;  %v606_v15 = vmul.f32 0.70710677, %v410_v38  ;;  %v590_v36 = vmul.f32 0.5, %v410_v38 }
 0x376   :  { %v1761_v53 = vpop.eup %1760  ;;  %1609 = vmatprep.subr.bf16.mxu0 %v1023_v0  ;;  %v994_v33 = vadd.f32 %v2439_v13, %v971_v28  ;;  %v946_v44 = vmul.f32 %v1759_v23, %v2340_v8  ;;  %v422_v63 = vpop.f32.mrf.mxu0  ;;  %1768 = verf.f32 %v605_v39  ;;  %v2525_v23 = vadd.f32 %v1573_v9, %v1474_v4 }
 0x377   :  { %v943_v49 = vmul.f32 %v1761_v53, %v2343_v17  ;;  %v991_v62 = vadd.f32 %v2439_v13, %v968_v10  ;;  %v1061_v7 = vpop.permute.xlu1 %1060  ;;  %v2517_v40 = vadd.f32 %v1474_v4, %v422_v63  ;;  %1770 = verf.f32 %v608_v42 }
 0x378   :  { %1610 = vmatpush3.bf16.msra.mxu0 %v1023_v0  ;;  %v1022_v59 = vpack.c.bf16 %v994_v33, %v993_v56  ;;  %v969_v50 = vmul.f32 %v2432_v41, %v946_v44  ;;  %v1574_v27 = vpop.f32.mrf.mxu0  ;;  %1772 = verf.f32 %v606_v15  ;;  %v611_v10 = vmul.f32 0.70710677, %v2525_v23 }
 0x379   :  { %v1763_v35 = vpop.eup %1762  ;;  %v966_v48 = vmul.f32 %v2432_v41, %v943_v49  ;;  %v2519_v57 = vadd.f32 %v1574_v27, %v1474_v4  ;;  %1774 = verf.f32 %v607_v51  ;;  %v609_v53 = vmul.f32 0.70710677, %v2517_v40 }
 0x37a   :  { %v1765_v61 = vpop.eup %1764  ;;  %1611 = vmatprep.subr.bf16.mxu0 %v1022_v59  ;;  %v992_v2 = vadd.f32 %v2439_v13, %v969_v50  ;;  %v944_v19 = vmul.f32 %v1763_v35, %v2352_v16  ;;  %v425_v30 = vpop.f32.mrf.mxu0 }
 0x37b   :  { %v941_v8 = vmul.f32 %v1765_v61, %v2355_v24  ;;  %v989_v3 = vadd.f32 %v2439_v13, %v966_v48  ;;  %v2521_v0 = vadd.f32 %v1474_v4, %v425_v30  ;;  %v2523_v28 = vpop.permute.xlu1 %1065  ;;  %v612_v56 = vmul.f32 0.70710677, %v2519_v57 }
 0x37c   :  { %1612 = vmatpush3.bf16.msra.mxu0 %v1022_v59  ;;  %v1021_v21 = vpack.c.bf16 %v992_v2, %v991_v62  ;;  %v967_v17 = vmul.f32 %v2432_v41, %v944_v19  ;;  %v1577_v31 = vpop.f32.mrf.mxu0  ;;  %1776 = verf.f32 %v609_v53  ;;  %v591_v30 = vmul.f32 0.5, %v2514_v12 }
 0x37d   :  { %v1767_v52 = vpop.eup %1766  ;;  %v964_v6 = vmul.f32 %v2432_v41, %v941_v8  ;;  %v610_v44 = vmul.f32 0.70710677, %v2521_v0  ;;  %1778 = verf.f32 %v612_v56  ;;  %v2539_v62 = vadd.f32 %v1577_v31, %v1474_v4 }
 0x37e   :  { %1613 = vmatprep.subr.bf16.mxu0 %v1021_v21  ;;  %v990_v25 = vadd.f32 %v2439_v13, %v967_v17  ;;  %v942_v22 = vmul.f32 %v1767_v52, %v2364_v47  ;;  %v1664_v47 = vld [vmem:[%s2727_s7 + $0x10] sm:$0xff]   ;;  %v438_v32 = vpop.f32.mrf.mxu0 }
 0x37f   :  { %v987_v24 = vadd.f32 %v2439_v13, %v964_v6  ;;  %v2531_v49 = vadd.f32 %v1474_v4, %v438_v32  ;;  %v2533_v59 = vpop.permute.xlu1 %1070  ;;  %1780 = verf.f32 %v610_v44 }
 0x380   :  { %1614 = vmatpush3.bf16.msra.mxu0 %v1021_v21  ;;  %v1020_v16 = vpack.c.bf16 %v990_v25, %v989_v3  ;;  %v965_v11 = vmul.f32 %v2432_v41, %v942_v22  ;;  %v1665_v41 = vld [vmem:[%s2727_s7 + $0x18] sm:$0xff]   ;;  %v1578_v55 = vpop.f32.mrf.mxu0  ;;  %1782 = verf.f32 %v611_v10  ;;  %v615_v25 = vmul.f32 0.70710677, %v2539_v62 }
 0x381   :  { %v2535_v50 = vadd.f32 %v1578_v55, %v1474_v4  ;;  %v613_v2 = vmul.f32 0.70710677, %v2531_v49 }
 0x382   :  { %1615 = vmatprep.subr.bf16.mxu0 %v1020_v16  ;;  %v988_v29 = vadd.f32 %v2439_v13, %v965_v11  ;;  %v1666_v13 = vld [vmem:[%s2727_s7 + $0x20] sm:$0xff]   ;;  %v441_v43 = vpop.f32.mrf.mxu0  ;;  %v589_v11 = vmul.f32 0.5, %v407_v5 }
 0x383   :  { %v2537_v61 = vadd.f32 %v1474_v4, %v441_v43  ;;  %v1769_v19 = vpop.eup %1768  ;;  %v616_v48 = vmul.f32 0.70710677, %v2535_v50  ;;  %v2544_v52 = vpop.permute.xlu1 %1075  ;;  %1784 = verf.f32 %v613_v2 }
 0x384   :  { %1616 = vmatpush3.bf16.msra.mxu0 %v1020_v16  ;;  %v1019_v58 = vpack.c.bf16 %v988_v29, %v987_v24  ;;  %v1581_v1 = vpop.f32.mrf.mxu0  ;;  %v1771_v21 = vpop.eup %1770 }
 0x385   :  { %v614_v17 = vmul.f32 0.70710677, %v2537_v61  ;;  %v1773_v3 = vpop.eup %1772  ;;  %1786 = verf.f32 %v616_v48  ;;  %v596_v48 = vmul.f32 0.5, %v2519_v57 }
 0x386   :  { %1617 = vmatprep.subr.bf16.mxu0 %v1019_v58  ;;  %v454_v33 = vpop.f32.mrf.mxu0  ;;  %v1775_v6 = vpop.eup %1774 }
 0x387   :  { %v2547_v16 = vadd.f32 %v1474_v4, %v454_v33  ;;  %1788 = verf.f32 %v614_v17  ;;  %v1081_v18 = vpop.permute.xlu1 %1080 }
 0x388   :  { %1618 = vmatpush3.bf16.msra.mxu0 %v1019_v58  ;;  %v1582_v35 = vpop.f32.mrf.mxu0  ;;  %v640_v58 = vadd.f32 1.0, %v1771_v21  ;;  %1790 = verf.f32 %v615_v25  ;;  %v594_v25 = vmul.f32 0.5, %v2521_v0 }
 0x389   :  { %v2549_v24 = vadd.f32 %v1582_v35, %v1474_v4  ;;  %v617_v26 = vmul.f32 0.70710677, %v2547_v16  ;;  %v1777_v27 = vpop.eup %1776 }
 0x38a   :  { %v457_v8 = vpop.f32.mrf.mxu0 }
 0x38b   :  { %1620 = vmatmul.mubr.bf16.vlgmr.msra.gmra.mxu0 %v1663_v20  ;;  %v2551_v20 = vadd.f32 %v1474_v4, %v457_v8  ;;  %v620_v31 = vmul.f32 0.70710677, %v2549_v24  ;;  %1792 = verf.f32 %v617_v26  ;;  %v1086_v35 = vpop.permute.xlu1 %1085 }
 0x38c   :  { %1623 = vmatprep.mubr.bf16.mxu0 %v1664_v47  ;;  %v637_v47 = vadd.f32 1.0, %v1769_v19 }
 0x38d   :  { %v618_v55 = vmul.f32 0.70710677, %v2551_v20  ;;  %1794 = verf.f32 %v620_v31 }
 0x38e   :  { %v653_v39 = vmul.f32 %v637_v47, %v589_v11 }
 0x38f   :  { %1796 = verf.f32 %v618_v55  ;;  %v597_v55 = vmul.f32 0.5, %v2531_v49 }
 0x393   :  { %1624 = vmatmul.mubr.bf16.gmra.mxu0 %v1665_v41  ;;  %v638_v41 = vadd.f32 1.0, %v1773_v3  ;;  %v593_v3 = vmul.f32 0.5, %v2517_v40 }
 0x394   :  { %1627 = vmatprep.mubr.bf16.mxu0 %v1666_v13  ;;  %v592_v13 = vmul.f32 0.5, %v418_v46 }
 0x395   :  { %v654_v42 = vmul.f32 %v638_v41, %v590_v36 }
 0x396   :  { %v656_v5 = vmul.f32 %v640_v58, %v592_v13 }
 0x39b   :  { %1628 = vmatmul.mubr.bf16.gmra.mxu0 %v1667_v45  ;;  %v2553_v45 = vadd.f32 %v1581_v1, %v1474_v4  ;;  %v1779_v4 = vpop.eup %1778 }
 0x39c   :  { %1631 = vmatprep.mubr.bf16.mxu0 %v1668_v37  ;;  %v1046_v37 = vpop.permute.xlu0 %1045  ;;  %v1781_v43 = vpop.eup %1780  ;;  %v644_v10 = vadd.f32 1.0, %v1779_v4 }
 0x39d   :  { %v619_v15 = vmul.f32 0.70710677, %v2553_v45  ;;  %v1783_v12 = vpop.eup %1782  ;;  %v642_v19 = vadd.f32 1.0, %v1781_v43 }
 0x39e   :  { %v643_v21 = vadd.f32 1.0, %v1783_v12  ;;  %v1785_v11 = vpop.eup %1784  ;;  %v660_v47 = vmul.f32 %v644_v10, %v596_v48 }
 0x39f   :  { %1798 = verf.f32 %v619_v15  ;;  %v1787_v41 = vpop.eup %1786  ;;  %v645_v31 = vadd.f32 1.0, %v1785_v11  ;;  %v599_v15 = vmul.f32 0.5, %v2539_v62 }
 0x3a0   :  { %v1789_v0 = vpop.eup %1788 }
 0x3a1   :  { %v1791_v26 = vpop.eup %1790 }
 0x3a2   :  { %v647_v4 = vadd.f32 1.0, %v1791_v26  ;;  %v1793_v43 = vpop.eup %1792 }
 0x3a3   :  { %1632 = vmatmul.mubr.bf16.gmra.mxu0 %v1669_v54  ;;  %v639_v54 = vadd.f32 1.0, %v1775_v6 }
 0x44b   :  { %v1621_v22 = vpop.f32.mrf.mxu0 }
 0x44c   :  { %v1214_v32 = vadd.f32 %v1621_v22, %v2509_v34  ;;  %v2562_v34 = vpop.permute.xlu0 %1090 }
 0x44d   :  { %v1205_v29 = vpop.f32.mrf.mxu0 }
 0x44e   :  { %v1206_v9 = vadd.f32 %v1205_v29, %v1046_v37  ;;  %v595_v29 = vmul.f32 0.5, %v2525_v23  ;;  %v658_v37 = vmul.f32 %v642_v19, %v594_v25  ;;  %v604_v25 = vmul.f32 0.5, %v2549_v24 }
 0x44f   :  { %v1622_v14 = vpop.f32.mrf.mxu0 }
 0x450   :  { %v1217_v63 = vadd.f32 %v1622_v14, %v1061_v7  ;;  %v655_v7 = vmul.f32 %v639_v54, %v591_v30  ;;  %v1268_v53 = vmul.f32 %v1206_v9, %v653_v39  ;;  %v1101_v54 = vpop.permute.xlu0 %1100  ;;  %v598_v39 = vmul.f32 0.5, %v2537_v61 }
 0x451   :  { %v1208_v46 = vpop.f32.mrf.mxu0 }
 0x452   :  { %v1209_v38 = vadd.f32 %v1208_v46, %v2507_v60  ;;  %v1271_v51 = vmul.f32 %v1217_v63, %v656_v5  ;;  %v1270_v33 = vmul.f32 %v1214_v32, %v655_v7  ;;  %v641_v60 = vadd.f32 1.0, %v1777_v27 }
 0x453   :  { %v1625_v1 = vpop.f32.mrf.mxu0  ;;  %v648_v27 = vadd.f32 1.0, %v1787_v41  ;;  %v646_v32 = vadd.f32 1.0, %v1789_v0  ;;  %v600_v5 = vmul.f32 0.5, %v2535_v50  ;;  %v1795_v50 = vpop.eup %1794 }
 0x454   :  { %v1269_v56 = vmul.f32 %v1209_v38, %v654_v42  ;;  %v1285_v8 = vpack.c.bf16 %v1271_v51, %v1270_v33  ;;  %v1230_v58 = vadd.f32 %v1625_v1, %v2544_v52  ;;  %v657_v13 = vmul.f32 %v641_v60, %v593_v3  ;;  %v1111_v7 = vpop.permute.xlu0 %1110  ;;  %v1797_v61 = vpop.eup %1796 }
 0x455   :  { %v1221_v44 = vpop.f32.mrf.mxu0  ;;  %v664_v1 = vmul.f32 %v648_v27, %v600_v5  ;;  %v662_v33 = vmul.f32 %v646_v32, %v598_v39  ;;  %v650_v3 = vadd.f32 1.0, %v1797_v61  ;;  %v1800_v27 = vld [vmem:[%s2721_s0 + $0x10] sm:$0xff]  ;;  %v1801_v5 = vld [vmem:[%s2721_s0] sm:$0xff] }
 0x456   :  { %v1284_v2 = vpack.c.bf16 %v1269_v56, %v1268_v53  ;;  %v1222_v22 = vadd.f32 %v1221_v44, %v2523_v28  ;;  %v659_v28 = vmul.f32 %v643_v21, %v595_v29  ;;  %v661_v56 = vmul.f32 %v645_v31, %v597_v55  ;;  %v1802_v55 = vld [vmem:[%s2721_s0 + $0x18] sm:$0xff] }
 0x457   :  { %v1626_v17 = vpop.f32.mrf.mxu0  ;;  %v663_v44 = vmul.f32 %v647_v4, %v599_v15 }
 0x458   :  { %v1233_v6 = vadd.f32 %v1626_v17, %v1081_v18  ;;  %1639 = vmatprep.mubr.msk.bf16.mxu1 %vm61_vm0, %v1284_v2  ;;  %v1096_v18 = vpop.permute.xlu1 %1095  ;;  %v1272_v9 = vmul.f32 %v1222_v22, %v657_v13  ;;  %v1274_v63 = vmul.f32 %v1230_v58, %v659_v28  ;;  %v1799_v2 = vpop.eup %1798  ;;  %v649_v17 = vadd.f32 1.0, %v1793_v43  ;;  %v1803_v43 = vld [vmem:[%s2721_s0 + $0x8] sm:$0xff] }
 0x459   :  { %v1224_v57 = vpop.f32.mrf.mxu0  ;;  %1640 = vmatmul.mubr.msk.bf16.vlgmr.msra.gmra.mxu1 %vm61_vm0, %v1285_v8  ;;  %v652_v8 = vadd.f32 1.0, %v1795_v50  ;;  %v1121_v22 = vpop.permute.xlu0 %1120  ;;  %v651_v11 = vadd.f32 1.0, %v1799_v2  ;;  %v602_v58 = vmul.f32 0.5, %v2551_v20  ;;  %v603_v13 = vmul.f32 0.5, %v2553_v45  ;;  %v2591_v45 = vld [vmem:[%s2733_s12] ss:$0 sm:$0xff] }
 0x45a   :  { %v1225_v40 = vadd.f32 %v1224_v57, %v2533_v59  ;;  %v1275_v14 = vmul.f32 %v1233_v6, %v660_v47 }
 0x45b   :  { %v1629_v36 = vpop.f32.mrf.mxu0 }
 0x45c   :  { %v1273_v23 = vmul.f32 %v1225_v40, %v658_v37  ;;  %v1287_v46 = vpack.c.bf16 %v1275_v14, %v1274_v63  ;;  %v1246_v51 = vadd.f32 %v1629_v36, %v1096_v18  ;;  %v1106_v53 = vpop.permute.xlu1 %1105  ;;  %v668_v40 = vmul.f32 %v652_v8, %v604_v25  ;;  %v1808_v8 = vld [vmem:[%s2721_s0 + $0x50] sm:$0xff]  ;;  %v1809_v25 = vld [vmem:[%s2721_s0 + $0x40] sm:$0xff] }
 0x45d   :  { %v1237_v52 = vpop.f32.mrf.mxu0  ;;  %v667_v14 = vmul.f32 %v651_v11, %v603_v13 }
 0x45e   :  { %v1286_v30 = vpack.c.bf16 %v1273_v23, %v1272_v9  ;;  %v1238_v42 = vadd.f32 %v1237_v52, %v1086_v35  ;;  %v1278_v62 = vmul.f32 %v1246_v51, %v663_v44  ;;  %v1806_v44 = vld [vmem:[%s2721_s0 + $0x38] sm:$0xff] }
 0x45f   :  { %v1630_v59 = vpop.f32.mrf.mxu0 }
 0x460   :  { %v1249_v38 = vadd.f32 %v1630_v59, %v1101_v54  ;;  %1643 = vmatprep.mubr.msk.bf16.mxu1 %vm61_vm0, %v1286_v30  ;;  %v1276_v60 = vmul.f32 %v1238_v42, %v661_v56  ;;  %v1116_v47 = vpop.permute.xlu1 %1115  ;;  %v666_v54 = vmul.f32 %v650_v3, %v602_v58  ;;  %v1805_v56 = vld [vmem:[%s2721_s0 + $0x20] sm:$0xff] }
 0x461   :  { %v1240_v12 = vpop.f32.mrf.mxu0  ;;  %1644 = vmatmul.mubr.msk.bf16.gmra.mxu1 %vm61_vm0, %v1287_v46 }
 0x462   :  { %v1241_v49 = vadd.f32 %v1240_v12, %v2562_v34  ;;  %v1279_v10 = vmul.f32 %v1249_v38, %v664_v1  ;;  %v601_v34 = vmul.f32 0.5, %v2547_v16  ;;  %v1804_v1 = vld [vmem:[%s2721_s0 + $0x30] sm:$0xff] }
 0x463   :  { %v1633_v35 = vpop.f32.mrf.mxu0 }
 0x464   :  { %v1277_v19 = vmul.f32 %v1241_v49, %v662_v33  ;;  %v1289_v6 = vpack.c.bf16 %v1279_v10, %v1278_v62  ;;  %v1262_v37 = vadd.f32 %v1633_v35, %v1116_v47  ;;  %v665_v24 = vmul.f32 %v649_v17, %v601_v34 }
 0x465   :  { %v1253_v48 = vpop.f32.mrf.mxu0 }
 0x466   :  { %v1288_v21 = vpack.c.bf16 %v1277_v19, %v1276_v60  ;;  %v1254_v57 = vadd.f32 %v1253_v48, %v1106_v53  ;;  %v1282_v20 = vmul.f32 %v1262_v37, %v667_v14  ;;  %v1807_v60 = vld [vmem:[%s2721_s0 + $0x28] sm:$0xff] }
 0x467   :  { %v1634_v29 = vpop.f32.mrf.mxu0 }
 0x468   :  { %v1265_v41 = vadd.f32 %v1634_v29, %v1121_v22  ;;  %1647 = vmatprep.mubr.msk.bf16.mxu1 %vm61_vm0, %v1288_v21  ;;  %v1280_v16 = vmul.f32 %v1254_v57, %v665_v24  ;;  %v1810_v29 = vld [vmem:[%s2721_s0 + $0x58] sm:$0xff]  ;;  %v1811_v57 = vld [vmem:[%s2721_s0 + $0x48] sm:$0xff] }
 0x469   :  { %v1256_v0 = vpop.f32.mrf.mxu0  ;;  %1648 = vmatmul.mubr.msk.bf16.gmra.mxu1 %vm61_vm0, %v1289_v6 }
 0x46a   :  { %v1257_v28 = vadd.f32 %v1256_v0, %v1111_v7  ;;  %v1283_v36 = vmul.f32 %v1265_v41, %v668_v40  ;;  %v1812_v40 = vld [vmem:[%s2721_s0 + $0x70] sm:$0xff] }
 0x46c   :  { %v1281_v26 = vmul.f32 %v1257_v28, %v666_v54  ;;  %v1291_v9 = vpack.c.bf16 %v1283_v36, %v1282_v20  ;;  %v1813_v28 = vld [vmem:[%s2721_s0 + $0x60] sm:$0xff] }
 0x46e   :  { %v1290_v18 = vpack.c.bf16 %v1281_v26, %v1280_v16  ;;  %v1814_v26 = vld [vmem:[%s2721_s0 + $0x78] sm:$0xff] }
 0x470   :  { %1651 = vmatprep.mubr.msk.bf16.mxu1 %vm61_vm0, %v1290_v18 }
 0x471   :  { %1652 = vmatmul.mubr.msk.bf16.gmra.mxu1 %vm61_vm0, %v1291_v9  ;;  %v1815_v9 = vld [vmem:[%s2721_s0 + $0x68] sm:$0xff] }
 0x519   :  { %v1641_v23 = vpop.f32.mrf.mxu1 }
 0x51a   :  { %v1382_v63 = vadd.f32 %v1641_v23, %v2591_v45 }
 0x51b   :  { %v1373_v52 = vpop.f32.mrf.mxu1 }
 0x51c   :  { %v1438_v30 = vadd.f32 %v1800_v27, %v1382_v63  ;;  %v1374_v31 = vadd.f32 %v2591_v45, %v1373_v52 }
 0x51d   :  { %v1642_v32 = vpop.f32.mrf.mxu1 }
 0x51e   :  { %1454 = vst.msk [vmem:[%s2734_s13 + $0x10] sm:$0xff] %vm61_vm0, %v1438_v30  ;;  %v1436_v46 = vadd.f32 %v1801_v5, %v1374_v31  ;;  %v1385_v4 = vadd.f32 %v1642_v32, %v2591_v45 }
 0x51f   :  { %v1376_v59 = vpop.f32.mrf.mxu1 }
 0x520   :  { %1452 = vst.msk [vmem:[%s2734_s13] sm:$0xff] %vm61_vm0, %v1436_v46  ;;  %v1439_v39 = vadd.f32 %v1802_v55, %v1385_v4  ;;  %v1377_v42 = vadd.f32 %v2591_v45, %v1376_v59 }
 0x521   :  { %v1645_v38 = vpop.f32.mrf.mxu1 }
 0x522   :  { %1455 = vst.msk [vmem:[%s2734_s13 + $0x18] sm:$0xff] %vm61_vm0, %v1439_v39  ;;  %v1437_v15 = vadd.f32 %v1803_v43, %v1377_v42  ;;  %v1398_v7 = vadd.f32 %v1645_v38, %v2591_v45 }
 0x523   :  { %v1389_v51 = vpop.f32.mrf.mxu1 }
 0x524   :  { %1453 = vst.msk [vmem:[%s2734_s13 + $0x8] sm:$0xff] %vm61_vm0, %v1437_v15  ;;  %v1442_v12 = vadd.f32 %v1804_v1, %v1398_v7  ;;  %v1390_v50 = vadd.f32 %v2591_v45, %v1389_v51 }
 0x525   :  { %v1646_v53 = vpop.f32.mrf.mxu1 }
 0x526   :  { %1458 = vst.msk [vmem:[%s2734_s13 + $0x30] sm:$0xff] %vm61_vm0, %v1442_v12  ;;  %v1440_v33 = vadd.f32 %v1805_v56, %v1390_v50  ;;  %v1401_v49 = vadd.f32 %v1646_v53, %v2591_v45 }
 0x527   :  { %v1392_v61 = vpop.f32.mrf.mxu1 }
 0x528   :  { %1456 = vst.msk [vmem:[%s2734_s13 + $0x20] sm:$0xff] %vm61_vm0, %v1440_v33  ;;  %v1443_v10 = vadd.f32 %v1806_v44, %v1401_v49  ;;  %v1393_v35 = vadd.f32 %v2591_v45, %v1392_v61 }
 0x529   :  { %v1649_v2 = vpop.f32.mrf.mxu1 }
 0x52a   :  { %1459 = vst.msk [vmem:[%s2734_s13 + $0x38] sm:$0xff] %vm61_vm0, %v1443_v10  ;;  %v1441_v19 = vadd.f32 %v1807_v60, %v1393_v35  ;;  %v1414_v62 = vadd.f32 %v1649_v2, %v2591_v45 }
 0x52b   :  { %v1405_v48 = vpop.f32.mrf.mxu1 }
 0x52c   :  { %1457 = vst.msk [vmem:[%s2734_s13 + $0x28] sm:$0xff] %vm61_vm0, %v1441_v19  ;;  %v1446_v21 = vadd.f32 %v1808_v8, %v1414_v62  ;;  %v1406_v17 = vadd.f32 %v2591_v45, %v1405_v48 }
 0x52d   :  { %v1650_v3 = vpop.f32.mrf.mxu1 }
 0x52e   :  { %1462 = vst.msk [vmem:[%s2734_s13 + $0x50] sm:$0xff] %vm61_vm0, %v1446_v21  ;;  %v1444_v22 = vadd.f32 %v1809_v25, %v1406_v17  ;;  %v1417_v6 = vadd.f32 %v1650_v3, %v2591_v45 }
 0x52f   :  { %v1408_v11 = vpop.f32.mrf.mxu1 }
 0x530   :  { %1460 = vst.msk [vmem:[%s2734_s13 + $0x40] sm:$0xff] %vm61_vm0, %v1444_v22  ;;  %v1447_v34 = vadd.f32 %v1810_v29, %v1417_v6  ;;  %v1409_v58 = vadd.f32 %v2591_v45, %v1408_v11 }
 0x531   :  { %v1653_v47 = vpop.f32.mrf.mxu1 }
 0x532   :  { %1463 = vst.msk [vmem:[%s2734_s13 + $0x58] sm:$0xff] %vm61_vm0, %v1447_v34  ;;  %v1445_v41 = vadd.f32 %v1811_v57, %v1409_v58  ;;  %v1430_v13 = vadd.f32 %v1653_v47, %v2591_v45 }
 0x533   :  { %v1421_v37 = vpop.f32.mrf.mxu1 }
 0x534   :  { %1461 = vst.msk [vmem:[%s2734_s13 + $0x48] sm:$0xff] %vm61_vm0, %v1445_v41  ;;  %v1450_v0 = vadd.f32 %v1812_v40, %v1430_v13  ;;  %v1422_v24 = vadd.f32 %v2591_v45, %v1421_v37 }
 0x535   :  { %v1654_v54 = vpop.f32.mrf.mxu1 }
 0x536   :  { %1466 = vst.msk [vmem:[%s2734_s13 + $0x70] sm:$0xff] %vm61_vm0, %v1450_v0  ;;  %v1448_v14 = vadd.f32 %v1813_v28, %v1422_v24  ;;  %v1433_v36 = vadd.f32 %v1654_v54, %v2591_v45 }
 0x537   :  { %v1424_v16 = vpop.f32.mrf.mxu1 }
 0x538   :  { %1464 = vst.msk [vmem:[%s2734_s13 + $0x60] sm:$0xff] %vm61_vm0, %v1448_v14  ;;  %v1451_v20 = vadd.f32 %v1814_v26, %v1433_v36  ;;  %v1425_v18 = vadd.f32 %v2591_v45, %v1424_v16 }
 0x53a   :  { %1467 = vst.msk [vmem:[%s2734_s13 + $0x78] sm:$0xff] %vm61_vm0, %v1451_v20  ;;  %v1449_v23 = vadd.f32 %v1815_v9, %v1425_v18 }
 0x53c   :  { %1465 = vst.msk [vmem:[%s2734_s13 + $0x68] sm:$0xff] %vm61_vm0, %v1449_v23 }

</bundles_post_ra>
